<compile_context>
chip_gen: v7x
topology: tpu7x:2x2x1
jax: 0.10.0
libtpu: 0.0.40
codegen_flags: <defaults>
</compile_context>

<pallas_src>
import functools
import math

import jax
import jax.numpy as jnp
from jax.experimental import pallas as pl
from jax.experimental.pallas import tpu as pltpu

NET_CHANNELS = 128
HEAD = 4
HEAD_DIM = NET_CHANNELS // HEAD
LAYER_NUM = 9
K_NEIGH = 64
ADJLAYER = (0, 4)
SINK_ITERS = 100
RES_PAD = -1e30  # value for padded KV columns of the residual-attention map

# (relu, instance_norm) per layer of each fused conv stack
PE_FLAGS = ((True, False),) * 4 + ((False, False),)          # position_encoder
PE2_FLAGS = ((True, False),) * 3 + ((False, False),)          # position_encoder2
DC_FLAGS = ((True, True), (True, True), (False, False))       # desc_compressor(2)
MID_FLAGS = ((True, False), (False, False))                   # mid projections
FP_FLAGS = ((False, False),)                                   # final_project


def _round_up(x, m):
    return ((x + m - 1) // m) * m


def _tile(dim, cap=1024):
    """Return (tile, padded_dim): full extent if <= cap else ~even 128-aligned tiles."""
    if dim <= cap:
        return dim, dim
    ntiles = -(-dim // cap)
    t = _round_up(-(-dim // ntiles), 128)
    return t, t * ntiles


@functools.lru_cache(maxsize=None)
def _vmem_limit_bytes():
    # ~100 MiB on 128-MiB parts (v5e/v6e), ~56 MiB on 64-MiB parts (v7x).
    cap = 64 * 1024 * 1024
    try:
        cap = int(getattr(pltpu.get_tpu_info(), "vmem_capacity_bytes", cap))
    except Exception:
        pass
    return int(min(100 * 1024 * 1024, (cap * 7) // 8))


# ----------------------------------------------------------------------------
# Fused 1x1-conv (MLP) stack kernel: BN folded, ReLU / InstanceNorm in-kernel
# ----------------------------------------------------------------------------
def _mlp_kernel(*refs, flags, batched):
    x_ref = refs[0]
    o_ref = refs[-1]
    w_refs = refs[1:-1]
    x = (x_ref[0] if batched else x_ref[...]).astype(jnp.float32)
    for li, (relu, inorm) in enumerate(flags):
        w = w_refs[3 * li][...]          # [Cin, Cout] bf16 (BN scale pre-folded)
        s = w_refs[3 * li + 1][...]      # [1, Cout] f32
        t = w_refs[3 * li + 2][...]      # [1, Cout] f32
        cin = w.shape[0]
        if cin <= 4:
            # tiny contraction (2 -> 32): VPU scaled-vector adds, skip the MXU
            wf = w.astype(jnp.float32)
            y = x[:, 0:1] * wf[0:1, :]
            for c in range(1, cin):
                y = y + x[:, c:c + 1] * wf[c:c + 1, :]
        else:
            y = jnp.dot(x.astype(jnp.bfloat16), w,
                        preferred_element_type=jnp.float32)
        if inorm:  # InstanceNorm1d over positions (per channel), biased var
            mu = jnp.mean(y, axis=0, keepdims=True)
            var = jnp.mean(jnp.square(y - mu), axis=0, keepdims=True)
            y = (y - mu) * jax.lax.rsqrt(var + 1e-5)
        y = y * s + t
        if relu:
            y = jnp.maximum(y, 0.0)
        x = y
    if batched:
        o_ref[0] = x.astype(o_ref.dtype)
    else:
        o_ref[...] = x.astype(o_ref.dtype)


@functools.partial(jax.jit, static_argnums=(0, 1))
def _mlp_rows_call(flags, out_dtype, x, *wst):
    rows, cin = x.shape
    cout = wst[-3].shape[1]
    max_rows = 2048
    if rows <= max_rows:
        tile, rows_pad = rows, rows
    else:
        tile = max_rows
        rows_pad = _round_up(rows, tile)
        x = jnp.pad(x, ((0, rows_pad - rows), (0, 0)))
    in_specs = [pl.BlockSpec((tile, cin), lambda i: (i, 0))]
    in_specs += [pl.BlockSpec(a.shape, lambda i: (0, 0)) for a in wst]
    out = pl.pallas_call(
        functools.partial(_mlp_kernel, flags=flags, batched=False),
        out_shape=jax.ShapeDtypeStruct((rows_pad, cout), out_dtype),
        grid=(rows_pad // tile,),
        in_specs=in_specs,
        out_specs=pl.BlockSpec((tile, cout), lambda i: (i, 0)),
        compiler_params=pltpu.CompilerParams(
            dimension_semantics=("parallel",),
            vmem_limit_bytes=_vmem_limit_bytes()),
    )(x, *wst)
    return out[:rows] if rows_pad != rows else out


@functools.partial(jax.jit, static_argnums=(0, 1))
def _mlp_batched_call(flags, out_dtype, x, *wst):
    # whole per-batch slab resident (needed for InstanceNorm over positions)
    b, n, cin = x.shape
    cout = wst[-3].shape[1]
    in_specs = [pl.BlockSpec((1, n, cin), lambda i: (i, 0, 0))]
    in_specs += [pl.BlockSpec(a.shape, lambda i: (0, 0)) for a in wst]
    return pl.pallas_call(
        functools.partial(_mlp_kernel, flags=flags, batched=True),
        out_shape=jax.ShapeDtypeStruct((b, n, cout), out_dtype),
        grid=(b,),
        in_specs=in_specs,
        out_specs=pl.BlockSpec((1, n, cout), lambda i: (i, 0, 0)),
        compiler_params=pltpu.CompilerParams(
            dimension_semantics=("parallel",),
            vmem_limit_bytes=_vmem_limit_bytes()),
    )(x, *wst)


def run_mlp_rows(layers, flags, x, out_dtype=jnp.float32):
    wst = []
    for l in layers:
        wst += [l["w"], l["s"], l["t"]]
    return _mlp_rows_call(flags, out_dtype, x, *wst)


def run_mlp_batched(layers, flags, x, out_dtype=jnp.float32):
    wst = []
    for l in layers:
        wst += [l["w"], l["s"], l["t"]]
    return _mlp_batched_call(flags, out_dtype, x, *wst)


# ----------------------------------------------------------------------------
# Tiled channels-last batched similarity:  out[b, n, m] = d1[b,n,:] . d2[b,m,:]
# ----------------------------------------------------------------------------
def _bmm_kernel(a_ref, b_ref, o_ref):
    a = a_ref[0].astype(jnp.bfloat16)
    b = b_ref[0].astype(jnp.bfloat16)
    o_ref[0] = jax.lax.dot_general(
        a, b, (((1,), (1,)), ((), ())), preferred_element_type=jnp.float32)


@jax.jit
def bmm_nt(a, b):
    B, N, C = a.shape
    M = b.shape[1]
    TN = N if N <= 512 else 512
    TM = M if M <= 512 else 512
    Np, Mp = _round_up(N, TN), _round_up(M, TM)
    ap = jnp.pad(a, ((0, 0), (0, Np - N), (0, 0))) if Np != N else a
    bp = jnp.pad(b, ((0, 0), (0, Mp - M), (0, 0))) if Mp != M else b
    out = pl.pallas_call(
        _bmm_kernel,
        out_shape=jax.ShapeDtypeStruct((B, Np, Mp), jnp.float32),
        grid=(B, Np // TN, Mp // TM),
        in_specs=[pl.BlockSpec((1, TN, C), lambda bi, i, j: (bi, i, 0)),
                  pl.BlockSpec((1, TM, C), lambda bi, i, j: (bi, j, 0))],
        out_specs=pl.BlockSpec((1, TN, TM), lambda bi, i, j: (bi, i, j)),
        compiler_params=pltpu.CompilerParams(
            dimension_semantics=("parallel", "parallel", "parallel")),
    )(ap, bp)
    return out[:, :N, :M] if (Np != N or Mp != M) else out


# ----------------------------------------------------------------------------
# Fused attention_propagantion kernel (dense eval branch)
#   one kernel: q/k/v proj + per-head threshold-masked attention (q/kv tiled)
#               + mh proj + (cat0+BN+ReLU, cat1) MLP + residual
# ----------------------------------------------------------------------------
def _attn_block_kernel(lam_ref, d1_ref, d2_ref, res_ref, thr_ref,
                       wq_ref, bq_ref, wk_ref, bk_ref, wv_ref, bv_ref,
                       wmh_ref, bmh_ref, wc0a_ref, wc0b_ref, bc0_ref,
                       wc1_ref, bc1_ref, o_ref, q_scr, acc_scr, den_scr):
    mj = pl.program_id(2)
    last = pl.num_programs(2) - 1

    @pl.when(mj == 0)
    def _init():
        d1 = d1_ref[0].astype(jnp.bfloat16)
        q_scr[...] = (jnp.dot(d1, wq_ref[...],
                              preferred_element_type=jnp.float32)
                      + bq_ref[...])
        acc_scr[...] = jnp.zeros_like(acc_scr)
        den_scr[...] = jnp.zeros_like(den_scr)

    d2 = d2_ref[0].astype(jnp.bfloat16)
    k = jnp.dot(d2, wk_ref[...], preferred_element_type=jnp.float32) + bk_ref[...]
    v = jnp.dot(d2, wv_ref[...], preferred_element_type=jnp.float32) + bv_ref[...]
    res = res_ref[0].astype(jnp.float32)            # bf16 -> f32
    # In-kernel mask: the PyTorch neigh masks are exactly `res >= kth-threshold`
    # of the streamed residual-attention map; padded KV columns carry -1e30.
    keep = res >= thr_ref[0]
    lam_vals = lam_ref[...]
    inv_sqrt_d = 1.0 / math.sqrt(HEAD_DIM)

    for h in range(HEAD):
        lo, hi = h * HEAD_DIM, (h + 1) * HEAD_DIM
        lam = lam_vals[0, h]
        qh = q_scr[:, lo:hi].astype(jnp.bfloat16)
        kh = k[:, lo:hi].astype(jnp.bfloat16)
        vh = v[:, lo:hi].astype(jnp.bfloat16)
        simi = jax.lax.dot_general(
            qh, kh, (((1,), (1,)), ((), ())),
            preferred_element_type=jnp.float32) * inv_sqrt_d
        simi = simi + lam * res
        # matches PyTorch: clamp(-30, 30).exp() * mask  (no max-subtraction)
        e = jnp.where(keep, jnp.exp(jnp.clip(simi, -30.0, 30.0)), 0.0)
        # denominator broadcast across the head's 32 lanes (no masked stores)
        den_scr[:, lo:hi] += jnp.sum(e, axis=-1, keepdims=True)
        acc_scr[:, lo:hi] += jnp.dot(e.astype(jnp.bfloat16), vh,
                                     preferred_element_type=jnp.float32)

    @pl.when(mj == last)
    def _finish():
        d1 = d1_ref[0]
        inv = pl.reciprocal(den_scr[...] + 1e-8, approx=True)
        addv = acc_scr[...] * inv
        addv = (jnp.dot(addv.astype(jnp.bfloat16), wmh_ref[...],
                        preferred_element_type=jnp.float32) + bmh_ref[...])
        # cat([desc1, addv]) @ Wcat0 split into two K=128 matmuls (no concat)
        y = (jnp.dot(d1.astype(jnp.bfloat16), wc0a_ref[...],
                     preferred_element_type=jnp.float32)
             + jnp.dot(addv.astype(jnp.bfloat16), wc0b_ref[...],
                       preferred_element_type=jnp.float32)
             + bc0_ref[...])
        y = jnp.maximum(y, 0.0)
        y = (jnp.dot(y.astype(jnp.bfloat16), wc1_ref[...],
                     preferred_element_type=jnp.float32) + bc1_ref[...])
        o_ref[0] = d1 + y


@jax.jit
def _attention_call(lam, d1, d2, res, thr,
                    wq, bq, wk, bk, wv, bv, wmh, bmh,
                    wc0a, wc0b, bc0, wc1, bc1):
    b, n, c = d1.shape
    m = d2.shape[1]
    n_pad, m_pad = res.shape[1], res.shape[2]          # pre-padded in packing
    tn, _ = _tile(n)
    tm, _ = _tile(m)
    if n_pad != n:
        d1 = jnp.pad(d1, ((0, 0), (0, n_pad - n), (0, 0)))
    if m_pad != m:
        d2 = jnp.pad(d2, ((0, 0), (0, m_pad - m), (0, 0)))
    weights = (wq, bq, wk, bk, wv, bv, wmh, bmh, wc0a, wc0b, bc0, wc1, bc1)
    w_specs = [pl.BlockSpec(w.shape, lambda bi, ni, mj: (0, 0)) for w in weights]
    out = pl.pallas_call(
        _attn_block_kernel,
        out_shape=jax.ShapeDtypeStruct((b, n_pad, c), jnp.float32),
        grid=(b, n_pad // tn, m_pad // tm),
        in_specs=[pl.BlockSpec((1, HEAD), lambda bi, ni, mj: (0, 0)),
                  pl.BlockSpec((1, tn, c), lambda bi, ni, mj: (bi, ni, 0)),
                  pl.BlockSpec((1, tm, c), lambda bi, ni, mj: (bi, mj, 0)),
                  pl.BlockSpec((1, tn, tm), lambda bi, ni, mj: (bi, ni, mj)),
                  pl.BlockSpec((1, tn, 1), lambda bi, ni, mj: (bi, ni, 0))]
                 + w_specs,
        out_specs=pl.BlockSpec((1, tn, c), lambda bi, ni, mj: (bi, ni, 0)),
        scratch_shapes=[pltpu.VMEM((tn, c), jnp.float32),
                        pltpu.VMEM((tn, c), jnp.float32),
                        pltpu.VMEM((tn, c), jnp.float32)],
        compiler_params=pltpu.CompilerParams(
            dimension_semantics=("parallel", "parallel", "arbitrary"),
            vmem_limit_bytes=_vmem_limit_bytes()),
    )(lam, d1, d2, res, thr, *weights)
    return out[:, :n] if n_pad != n else out


def attention_block(ap, d1, d2, res_bf, thr):
    return _attention_call(ap["lam"], d1, d2, res_bf, thr,
                           ap["wq"], ap["bq"], ap["wk"], ap["bk"],
                           ap["wv"], ap["bv"], ap["wmh"], ap["bmh"],
                           ap["wc0a"], ap["wc0b"], ap["bc0"],
                           ap["wc1"], ap["bc1"])


# ----------------------------------------------------------------------------
# Sinkhorn (log-domain), dustbin row/col + final_norm affine fused in-kernel
# ----------------------------------------------------------------------------
def _sinkhorn_kernel(scal_ref, s_ref, o_ref, *, iters, m, n, unroll):
    alpha = scal_ref[0, 0]
    mean = scal_ref[0, 1]
    scale = scal_ref[0, 2]
    shift = scal_ref[0, 3]
    norm = -math.log(m + n)

    # couplings: scores (with final_norm affine) in the top-left, dustbin alpha
    # in the extra row / column -- staged in the output block (VMEM).
    o_ref[0] = jnp.zeros((m + 1, n + 1), jnp.float32) + alpha
    o_ref[0, :m, :n] = (s_ref[0] - mean) * scale + shift
    Z = o_ref[0]

    row = jax.lax.broadcasted_iota(jnp.int32, (m + 1, 1), 0)
    col = jax.lax.broadcasted_iota(jnp.int32, (1, n + 1), 1)
    log_mu = jnp.where(row < m, norm, math.log(n) + norm)     # [m+1, 1]
    log_nu = jnp.where(col < n, norm, math.log(m) + norm)     # [1, n+1]

    def lse_rows(x):
        mx = jnp.max(x, axis=1, keepdims=True)
        return mx + jnp.log(jnp.sum(jnp.exp(x - mx), axis=1, keepdims=True))

    def lse_cols(x):
        mx = jnp.max(x, axis=0, keepdims=True)
        return mx + jnp.log(jnp.sum(jnp.exp(x - mx), axis=0, keepdims=True))

    def one_iter(u, v):
        u = log_mu - lse_rows(Z + v)
        v = log_nu - lse_cols(Z + u)
        return u, v

    def body(_, uv):
        u, v = uv
        for _ in range(unroll):   # small static unroll -> EUP/XLU overlap
            u, v = one_iter(u, v)
        return (u, v)

    u = jnp.zeros((m + 1, 1), jnp.float32)
    v = jnp.zeros((1, n + 1), jnp.float32)
    u, v = jax.lax.fori_loop(0, iters // unroll, body, (u, v))
    for _ in range(iters % unroll):
        u, v = one_iter(u, v)
    o_ref[0] = jnp.exp(Z + u + v - norm)


@functools.partial(jax.jit, static_argnums=(2,))
def _sinkhorn_call(scores, scalars, iters):
    b, m, n = scores.shape
    kern = functools.partial(_sinkhorn_kernel, iters=iters, m=m, n=n, unroll=2)
    return pl.pallas_call(
        kern,
        out_shape=jax.ShapeDtypeStruct((b, m + 1, n + 1), jnp.float32),
        grid=(b,),
        in_specs=[pl.BlockSpec((1, 4), lambda i: (0, 0)),
                  pl.BlockSpec((1, m, n), lambda i: (i, 0, 0))],
        out_specs=pl.BlockSpec((1, m + 1, n + 1), lambda i: (i, 0, 0)),
        compiler_params=pltpu.CompilerParams(
            dimension_semantics=("parallel",),
            vmem_limit_bytes=_vmem_limit_bytes()),
    )(scalars, scores)


def log_optimal_transport(scores, alpha, norm_mean, norm_scale, norm_shift, iters):
    scalars = jnp.stack([alpha.reshape(()), norm_mean.reshape(()),
                         norm_scale.reshape(()), norm_shift.reshape(())])
    scalars = scalars.reshape(1, 4).astype(jnp.float32)
    return _sinkhorn_call(scores.astype(jnp.float32), scalars, iters)


# ----------------------------------------------------------------------------
# Glue (neighbour mining -> thresholds, packing, layout, forward)
# ----------------------------------------------------------------------------
def l2_normalize(x, axis=-1, eps=1e-12):
    n = jnp.sqrt(jnp.sum(x * x, axis=axis, keepdims=True))
    return x / jnp.maximum(n, eps)


def cross_neigh_mining(d1, d2, k, res=0.0):
    # d1: [b, n, c], d2: [b, m, c]  (eval / <2500 branch)
    k = k + 1  # eval mode
    simi = bmm_nt(d1, d2) + res
    b, n, m = simi.shape
    top12, _ = jax.lax.top_k(simi, min(k, m))
    top21, _ = jax.lax.top_k(jnp.swapaxes(simi, -1, -2), min(k, n))
    thr12 = top12[:, :, -1][..., None]     # [b, n, 1]
    thr21 = top21[:, :, -1][..., None]     # [b, m, 1]
    return thr12, thr21, simi


def self_neigh_mining(pos, k, res=0.0):
    b, n, c = pos.shape
    k = min(k + 1, n)  # eval mode
    simi = bmm_nt(pos, pos) - 10.0 * jnp.eye(n, dtype=jnp.float32)[None] + res
    top12, _ = jax.lax.top_k(simi, k)
    thr = top12[:, :, -1][..., None]       # [b, n, 1]
    return thr, simi


def _pack_side(simi_bf, thr, n_pad, m_pad):
    """Pad (rows/cols) once per mining stage; KV padding carries RES_PAD."""
    b, n, m = simi_bf.shape
    res = simi_bf.astype(jnp.bfloat16)
    if n_pad != n or m_pad != m:
        res = jnp.pad(res, ((0, 0), (0, n_pad - n), (0, m_pad - m)),
                      constant_values=RES_PAD)
    # round thr through bf16 so the in-kernel compare is monotone-consistent
    thr = thr.astype(jnp.bfloat16).astype(jnp.float32)
    if n_pad != n:
        thr = jnp.pad(thr, ((0, 0), (0, n_pad - n), (0, 0)))
    return res, thr


def _pack_all(n1, n2, cross_res, thr12, thr21,
              self_res1, thr_s1, self_res2, thr_s2):
    _, p1 = _tile(n1)
    _, p2 = _tile(n2)
    cross_bf = cross_res.astype(jnp.bfloat16)
    res_s1, th_s1 = _pack_side(self_res1.astype(jnp.bfloat16), thr_s1, p1, p1)
    res_s2, th_s2 = _pack_side(self_res2.astype(jnp.bfloat16), thr_s2, p2, p2)
    res_c12, th_c12 = _pack_side(cross_bf, thr12, p1, p2)
    res_c21, th_c21 = _pack_side(jnp.swapaxes(cross_bf, -1, -2), thr21, p2, p1)
    return (res_s1, th_s1, res_s2, th_s2, res_c12, th_c12, res_c21, th_c21)


def matcher_forward(prepared, data):
    desc1 = l2_normalize(data["desc1"])           # [b, n1, 128]
    desc2 = l2_normalize(data["desc2"])           # [b, n2, 128]
    b, n1, _ = desc1.shape
    n2 = desc2.shape[1]
    nt = n1 + n2
    x1 = data["x1"][:, :, :2]                     # [b, n1, 2]
    x2 = data["x2"][:, :, :2]
    x_cat = jnp.concatenate([x1, x2], axis=1)     # [b, nt, 2]

    pos128 = run_mlp_rows(prepared["position_encoder"], PE_FLAGS,
                          x_cat.reshape(b * nt, 2)).reshape(b, nt, NET_CHANNELS)
    x1_pos, x2_pos = pos128[:, :n1], pos128[:, n1:]

    desc_cat = jnp.concatenate([desc1, desc2], axis=1)    # [b, nt, 128]
    aug_desc = run_mlp_batched(prepared["desc_compressor"], DC_FLAGS, desc_cat)
    aug_desc1 = aug_desc[:, :n1] + x1_pos
    aug_desc2 = aug_desc[:, n1:] + x2_pos

    aug_desc_ = run_mlp_batched(prepared["desc_compressor2"], DC_FLAGS,
                                desc_cat, out_dtype=jnp.bfloat16)
    thr12, thr21, cross_res = cross_neigh_mining(
        aug_desc_[:, :n1], aug_desc_[:, n1:], K_NEIGH // 2)

    pos32 = run_mlp_rows(prepared["position_encoder2"], PE2_FLAGS,
                         x_cat.reshape(b * nt, 2),
                         out_dtype=jnp.bfloat16).reshape(b, nt, NET_CHANNELS // 4)
    thr_s1, self_res1 = self_neigh_mining(pos32[:, :n1], K_NEIGH)
    thr_s2, self_res2 = self_neigh_mining(pos32[:, n1:], K_NEIGH)

    packed = _pack_all(n1, n2, cross_res, thr12, thr21,
                       self_res1, thr_s1, self_res2, thr_s2)

    for i in range(LAYER_NUM):
        if i in ADJLAYER and i != 0:
            mid_rows = jnp.concatenate([aug_desc1, aug_desc2],
                                       axis=1).reshape(b * nt, NET_CHANNELS)
            d_proj = run_mlp_rows(prepared["desc_mid_project"], MID_FLAGS,
                                  mid_rows, out_dtype=jnp.bfloat16).reshape(b, nt, -1)
            p_proj = run_mlp_rows(prepared["pos_mid_project"], MID_FLAGS,
                                  mid_rows, out_dtype=jnp.bfloat16).reshape(b, nt, -1)
            thr12, thr21, cross_res = cross_neigh_mining(
                d_proj[:, :n1], d_proj[:, n1:], K_NEIGH // 4, res=cross_res)
            thr_s1, self_res1 = self_neigh_mining(p_proj[:, :n1], K_NEIGH,
                                                  res=self_res1)
            thr_s2, self_res2 = self_neigh_mining(p_proj[:, n1:], K_NEIGH,
                                                  res=self_res2)
            packed = _pack_all(n1, n2, cross_res, thr12, thr21,
                               self_res1, thr_s1, self_res2, thr_s2)
        (res_s1, th_s1, res_s2, th_s2,
         res_c12, th_c12, res_c21, th_c21) = packed
        blk = prepared["blks"][i]
        # Dropout(0.01) on cross_res is identity in eval.
        nd1 = attention_block(blk["self"], aug_desc1, aug_desc1, res_s1, th_s1)
        nd2 = attention_block(blk["self"], aug_desc2, aug_desc2, res_s2, th_s2)
        new1 = attention_block(blk["cross"], nd1, nd2, res_c12, th_c12)
        new2 = attention_block(blk["cross"], nd2, nd1, res_c21, th_c21)
        aug_desc1, aug_desc2 = new1, new2

    fin_rows = jnp.concatenate([aug_desc1, aug_desc2],
                               axis=1).reshape(b * nt, NET_CHANNELS)
    fin = run_mlp_rows(prepared["final_project"], FP_FLAGS, fin_rows,
                       out_dtype=jnp.bfloat16).reshape(b, nt, NET_CHANNELS)
    desc_mat = bmm_nt(fin[:, :n1], fin[:, n1:])           # [b, n1, n2] f32

    fnm = prepared["final_norm"]                          # SyncBatchNorm(1) eval
    p = log_optimal_transport(desc_mat, prepared["dustbin"],
                              fnm["mean"], fnm["scale"], fnm["shift"],
                              SINK_ITERS)
    return {"p": p}


# ----------------------------------------------------------------------------
# Parameter init (deterministic, shapes per module __init__) and preparation
# (BN folding, weight transpose, bf16 cast)
# ----------------------------------------------------------------------------
def init_params(key):
    keys = iter(jax.random.split(key, 1024))

    def conv(cin, cout, bias=True):
        bound = 1.0 / math.sqrt(cin)
        w = jax.random.uniform(next(keys), (cout, cin), jnp.float32, -bound, bound)
        b = (jax.random.uniform(next(keys), (cout,), jnp.float32, -bound, bound)
             if bias else jnp.zeros((cout,), jnp.float32))
        return {"w": w, "b": b}

    def bn(c):
        return {"gamma": jnp.ones((c,), jnp.float32),
                "beta": jnp.zeros((c,), jnp.float32),
                "rm": jnp.zeros((c,), jnp.float32),
                "rv": jnp.ones((c,), jnp.float32)}

    def attn_prop():
        return {"res_lam": jnp.ones((1, HEAD, 1, 1), jnp.float32),
                "q": conv(128, 128), "k": conv(128, 128), "v": conv(128, 128),
                "mh": conv(128, 128),
                "cat0": conv(256, 256, bias=False), "cat_bn": bn(256),
                "cat1": conv(256, 128)}

    def compressor():
        return {"convs": [conv(128, 256, False), conv(256, 256, False),
                          conv(256, 128, True)],
                "bns": [bn(256), bn(256)]}

    def mid_project():
        return {"convs": [conv(128, 256, False), conv(256, 32, True)],
                "bns": [bn(256)]}

    return {
        "position_encoder": {
            "convs": [conv(2, 32, False), conv(32, 64, False),
                      conv(64, 128, False), conv(128, 256, False),
                      conv(256, 128, True)],
            "bns": [bn(32), bn(64), bn(128), bn(256)]},
        "position_encoder2": {
            "convs": [conv(2, 32, False), conv(32, 64, False),
                      conv(64, 128, False), conv(128, 32, True)],
            "bns": [bn(32), bn(64), bn(128)]},
        "desc_compressor": compressor(),
        "desc_compressor2": compressor(),
        "desc_mid_project": mid_project(),
        "pos_mid_project": mid_project(),
        "dustbin": jnp.array(1.0, jnp.float32),
        "blks": [{"self": attn_prop(), "cross": attn_prop()}
                 for _ in range(LAYER_NUM)],
        "final_project": conv(128, 128, True),
        "final_norm": bn(1),
    }


def prepare_params(p):
    def layer(conv, bn=None, inorm=False):
        wt = jnp.transpose(conv["w"]).astype(jnp.float32)   # [cin, cout]
        bias = conv["b"].astype(jnp.float32)
        if bn is not None:
            s = bn["gamma"] * jax.lax.rsqrt(bn["rv"] + 1e-5)
            t = bn["beta"] - bn["rm"] * s
        else:
            s = jnp.ones_like(bias)
            t = jnp.zeros_like(bias)
        if inorm:
            # InstanceNorm sits between conv and BN -> keep scale/shift apart
            w, scale, shift = wt, s, t
        else:
            w = wt * s[None, :]
            scale = jnp.ones_like(bias)
            shift = bias * s + t
        return {"w": w.astype(jnp.bfloat16),
                "s": scale[None, :].astype(jnp.float32),
                "t": shift[None, :].astype(jnp.float32)}

    def mlp(convs, bns, inorm_flags):
        out = []
        for i, c in enumerate(convs):
            bn = bns[i] if i < len(bns) else None
            out.append(layer(c, bn, inorm_flags[i]))
        return out

    def attn(ap):
        cb = ap["cat_bn"]
        s = cb["gamma"] * jax.lax.rsqrt(cb["rv"] + 1e-5)
        t = cb["beta"] - cb["rm"] * s
        wc0 = jnp.transpose(ap["cat0"]["w"]) * s[None, :]   # [256, 256], BN folded

        def wt(name):
            return jnp.transpose(ap[name]["w"]).astype(jnp.bfloat16)

        def bs(name):
            return ap[name]["b"][None, :].astype(jnp.float32)

        return {"lam": ap["res_lam"].reshape(1, HEAD).astype(jnp.float32),
                "wq": wt("q"), "bq": bs("q"),
                "wk": wt("k"), "bk": bs("k"),
                "wv": wt("v"), "bv": bs("v"),
                "wmh": wt("mh"), "bmh": bs("mh"),
                "wc0a": wc0[:NET_CHANNELS, :].astype(jnp.bfloat16),
                "wc0b": wc0[NET_CHANNELS:, :].astype(jnp.bfloat16),
                "bc0": t[None, :].astype(jnp.float32),
                "wc1": jnp.transpose(ap["cat1"]["w"]).astype(jnp.bfloat16),
                "bc1": ap["cat1"]["b"][None, :].astype(jnp.float32)}

    fn = p["final_norm"]
    return {
        "position_encoder": mlp(p["position_encoder"]["convs"],
                                p["position_encoder"]["bns"], (False,) * 5),
        "position_encoder2": mlp(p["position_encoder2"]["convs"],
                                 p["position_encoder2"]["bns"], (False,) * 4),
        "desc_compressor": mlp(p["desc_compressor"]["convs"],
                               p["desc_compressor"]["bns"], (True, True, False)),
        "desc_compressor2": mlp(p["desc_compressor2"]["convs"],
                                p["desc_compressor2"]["bns"], (True, True, False)),
        "desc_mid_project": mlp(p["desc_mid_project"]["convs"],
                                p["desc_mid_project"]["bns"], (False, False)),
        "pos_mid_project": mlp(p["pos_mid_project"]["convs"],
                               p["pos_mid_project"]["bns"], (False, False)),
        "final_project": [layer(p["final_project"], None, False)],
        "blks": [{"self": attn(b["self"]), "cross": attn(b["cross"])}
                 for b in p["blks"]],
        "dustbin": p["dustbin"],
        "final_norm": {"mean": fn["rm"][0],
                       "scale": fn["gamma"][0] * jax.lax.rsqrt(fn["rv"][0] + 1e-5),
                       "shift": fn["beta"][0]},
    }


if __name__ == "__main__":
    key = jax.random.PRNGKey(0)
    kp, kd1, kd2, kx1, kx2 = jax.random.split(key, 5)
    raw_params = init_params(kp)
    prepared = prepare_params(raw_params)

    b, n1, n2, c = 2, 40, 40, NET_CHANNELS
    data = {
        "desc1": jax.random.normal(kd1, (b, n1, c), jnp.float32),
        "desc2": jax.random.normal(kd2, (b, n2, c), jnp.float32),
        "x1": jax.random.uniform(kx1, (b, n1, 3), jnp.float32, -1.0, 1.0),
        "x2": jax.random.uniform(kx2, (b, n2, 3), jnp.float32, -1.0, 1.0),
    }

    fwd = jax.jit(matcher_forward)
    out = fwd(prepared, data)
    p = jax.block_until_ready(out["p"])
    assert p.shape == (b, n1 + 1, n2 + 1), p.shape
    assert bool(jnp.all(jnp.isfinite(p)))
    print("KERNEL_OK")
</pallas_src>

<mosaic_0001>
module attributes {stable_mosaic.version = 11 : i64} {
  func.func @_mlp_kernel(%arg0: i32, %arg1: memref<160x2xf32, #tpu.memory_space<vmem>>, %arg2: memref<2x32xbf16, #tpu.memory_space<vmem>>, %arg3: memref<1x32xf32, #tpu.memory_space<vmem>>, %arg4: memref<1x32xf32, #tpu.memory_space<vmem>>, %arg5: memref<32x64xbf16, #tpu.memory_space<vmem>>, %arg6: memref<1x64xf32, #tpu.memory_space<vmem>>, %arg7: memref<1x64xf32, #tpu.memory_space<vmem>>, %arg8: memref<64x128xbf16, #tpu.memory_space<vmem>>, %arg9: memref<1x128xf32, #tpu.memory_space<vmem>>, %arg10: memref<1x128xf32, #tpu.memory_space<vmem>>, %arg11: memref<128x256xbf16, #tpu.memory_space<vmem>>, %arg12: memref<1x256xf32, #tpu.memory_space<vmem>>, %arg13: memref<1x256xf32, #tpu.memory_space<vmem>>, %arg14: memref<256x128xbf16, #tpu.memory_space<vmem>>, %arg15: memref<1x128xf32, #tpu.memory_space<vmem>>, %arg16: memref<1x128xf32, #tpu.memory_space<vmem>>, %arg17: memref<160x128xf32, #tpu.memory_space<vmem>>) attributes {dimension_semantics = [#tpu.dimension_semantics<parallel>], iteration_bounds = array<i64: 1>, scalar_prefetch = 0 : i64, scratch_operands = 0 : i64, tpu.core_type = #tpu.core_type<tc>, window_params = [{transform_indices = @transform_0, window_bounds = array<i64: 160, 2>}, {pipeline_mode = #tpu.pipeline_mode<synchronous>, transform_indices = @transform_1, window_bounds = array<i64: 2, 32>}, {pipeline_mode = #tpu.pipeline_mode<synchronous>, transform_indices = @transform_2, window_bounds = array<i64: 1, 32>}, {pipeline_mode = #tpu.pipeline_mode<synchronous>, transform_indices = @transform_3, window_bounds = array<i64: 1, 32>}, {pipeline_mode = #tpu.pipeline_mode<synchronous>, transform_indices = @transform_4, window_bounds = array<i64: 32, 64>}, {pipeline_mode = #tpu.pipeline_mode<synchronous>, transform_indices = @transform_5, window_bounds = array<i64: 1, 64>}, {pipeline_mode = #tpu.pipeline_mode<synchronous>, transform_indices = @transform_6, window_bounds = array<i64: 1, 64>}, {pipeline_mode = #tpu.pipeline_mode<synchronous>, transform_indices = @transform_7, window_bounds = array<i64: 64, 128>}, {pipeline_mode = #tpu.pipeline_mode<synchronous>, transform_indices = @transform_8, window_bounds = array<i64: 1, 128>}, {pipeline_mode = #tpu.pipeline_mode<synchronous>, transform_indices = @transform_9, window_bounds = array<i64: 1, 128>}, {pipeline_mode = #tpu.pipeline_mode<synchronous>, transform_indices = @transform_10, window_bounds = array<i64: 128, 256>}, {pipeline_mode = #tpu.pipeline_mode<synchronous>, transform_indices = @transform_11, window_bounds = array<i64: 1, 256>}, {pipeline_mode = #tpu.pipeline_mode<synchronous>, transform_indices = @transform_12, window_bounds = array<i64: 1, 256>}, {pipeline_mode = #tpu.pipeline_mode<synchronous>, transform_indices = @transform_13, window_bounds = array<i64: 256, 128>}, {pipeline_mode = #tpu.pipeline_mode<synchronous>, transform_indices = @transform_14, window_bounds = array<i64: 1, 128>}, {pipeline_mode = #tpu.pipeline_mode<synchronous>, transform_indices = @transform_15, window_bounds = array<i64: 1, 128>}, {transform_indices = @transform_16, window_bounds = array<i64: 160, 128>}]} {
    %c0 = arith.constant 0 : index
    %c0_0 = arith.constant 0 : index
    %0 = vector.load %arg1[%c0, %c0_0] : memref<160x2xf32, #tpu.memory_space<vmem>>, vector<160x2xf32>
    %c0_1 = arith.constant 0 : index
    %c0_2 = arith.constant 0 : index
    %1 = vector.load %arg2[%c0_1, %c0_2] : memref<2x32xbf16, #tpu.memory_space<vmem>>, vector<2x32xbf16>
    %c0_3 = arith.constant 0 : index
    %c0_4 = arith.constant 0 : index
    %2 = vector.load %arg3[%c0_3, %c0_4] : memref<1x32xf32, #tpu.memory_space<vmem>>, vector<1x32xf32>
    %c0_5 = arith.constant 0 : index
    %c0_6 = arith.constant 0 : index
    %3 = vector.load %arg4[%c0_5, %c0_6] : memref<1x32xf32, #tpu.memory_space<vmem>>, vector<1x32xf32>
    %4 = arith.extf %1 : vector<2x32xbf16> to vector<2x32xf32>
    %5 = vector.extract_strided_slice %0 {offsets = [0, 0], sizes = [160, 1], strides = [1, 1]} : vector<160x2xf32> to vector<160x1xf32>
    %6 = vector.extract_strided_slice %4 {offsets = [0, 0], sizes = [1, 32], strides = [1, 1]} : vector<2x32xf32> to vector<1x32xf32>
    %7 = vector.broadcast %5 : vector<160x1xf32> to vector<160x32xf32>
    %8 = vector.broadcast %6 : vector<1x32xf32> to vector<160x32xf32>
    %9 = arith.mulf %7, %8 : vector<160x32xf32>
    %10 = vector.extract_strided_slice %0 {offsets = [0, 1], sizes = [160, 1], strides = [1, 1]} : vector<160x2xf32> to vector<160x1xf32>
    %11 = vector.extract_strided_slice %4 {offsets = [1, 0], sizes = [1, 32], strides = [1, 1]} : vector<2x32xf32> to vector<1x32xf32>
    %12 = vector.broadcast %10 : vector<160x1xf32> to vector<160x32xf32>
    %13 = vector.broadcast %11 : vector<1x32xf32> to vector<160x32xf32>
    %14 = arith.mulf %12, %13 : vector<160x32xf32>
    %15 = arith.addf %9, %14 : vector<160x32xf32>
    %16 = vector.broadcast %2 : vector<1x32xf32> to vector<160x32xf32>
    %17 = arith.mulf %15, %16 : vector<160x32xf32>
    %18 = vector.broadcast %3 : vector<1x32xf32> to vector<160x32xf32>
    %19 = arith.addf %17, %18 : vector<160x32xf32>
    %cst = arith.constant 0.000000e+00 : f32
    %20 = vector.broadcast %cst : f32 to vector<160x32xf32>
    %21 = arith.maximumf %19, %20 : vector<160x32xf32>
    %c0_7 = arith.constant 0 : index
    %c0_8 = arith.constant 0 : index
    %22 = vector.load %arg5[%c0_7, %c0_8] : memref<32x64xbf16, #tpu.memory_space<vmem>>, vector<32x64xbf16>
    %c0_9 = arith.constant 0 : index
    %c0_10 = arith.constant 0 : index
    %23 = vector.load %arg6[%c0_9, %c0_10] : memref<1x64xf32, #tpu.memory_space<vmem>>, vector<1x64xf32>
    %c0_11 = arith.constant 0 : index
    %c0_12 = arith.constant 0 : index
    %24 = vector.load %arg7[%c0_11, %c0_12] : memref<1x64xf32, #tpu.memory_space<vmem>>, vector<1x64xf32>
    %25 = arith.truncf %21 : vector<160x32xf32> to vector<160x32xbf16>
    %cst_13 = arith.constant dense<0.000000e+00> : vector<160x64xf32>
    %26 = tpu.matmul %25, %22, %cst_13 {dimension_numbers = #tpu.dot_dimension_numbers<[1], [0], [0], [1], [0, 0, 1, 1], [], []>} : vector<160x32xbf16>, vector<32x64xbf16>, vector<160x64xf32> -> vector<160x64xf32>
    %27 = vector.broadcast %23 : vector<1x64xf32> to vector<160x64xf32>
    %28 = arith.mulf %26, %27 : vector<160x64xf32>
    %29 = vector.broadcast %24 : vector<1x64xf32> to vector<160x64xf32>
    %30 = arith.addf %28, %29 : vector<160x64xf32>
    %cst_14 = arith.constant 0.000000e+00 : f32
    %31 = vector.broadcast %cst_14 : f32 to vector<160x64xf32>
    %32 = arith.maximumf %30, %31 : vector<160x64xf32>
    %c0_15 = arith.constant 0 : index
    %c0_16 = arith.constant 0 : index
    %33 = vector.load %arg8[%c0_15, %c0_16] : memref<64x128xbf16, #tpu.memory_space<vmem>>, vector<64x128xbf16>
    %c0_17 = arith.constant 0 : index
    %c0_18 = arith.constant 0 : index
    %34 = vector.load %arg9[%c0_17, %c0_18] : memref<1x128xf32, #tpu.memory_space<vmem>>, vector<1x128xf32>
    %c0_19 = arith.constant 0 : index
    %c0_20 = arith.constant 0 : index
    %35 = vector.load %arg10[%c0_19, %c0_20] : memref<1x128xf32, #tpu.memory_space<vmem>>, vector<1x128xf32>
    %36 = arith.truncf %32 : vector<160x64xf32> to vector<160x64xbf16>
    %cst_21 = arith.constant dense<0.000000e+00> : vector<160x128xf32>
    %37 = tpu.matmul %36, %33, %cst_21 {dimension_numbers = #tpu.dot_dimension_numbers<[1], [0], [0], [1], [0, 0, 1, 1], [], []>} : vector<160x64xbf16>, vector<64x128xbf16>, vector<160x128xf32> -> vector<160x128xf32>
    %38 = vector.broadcast %34 : vector<1x128xf32> to vector<160x128xf32>
    %39 = arith.mulf %37, %38 : vector<160x128xf32>
    %40 = vector.broadcast %35 : vector<1x128xf32> to vector<160x128xf32>
    %41 = arith.addf %39, %40 : vector<160x128xf32>
    %cst_22 = arith.constant 0.000000e+00 : f32
    %42 = vector.broadcast %cst_22 : f32 to vector<160x128xf32>
    %43 = arith.maximumf %41, %42 : vector<160x128xf32>
    %c0_23 = arith.constant 0 : index
    %c0_24 = arith.constant 0 : index
    %44 = vector.load %arg11[%c0_23, %c0_24] : memref<128x256xbf16, #tpu.memory_space<vmem>>, vector<128x256xbf16>
    %c0_25 = arith.constant 0 : index
    %c0_26 = arith.constant 0 : index
    %45 = vector.load %arg12[%c0_25, %c0_26] : memref<1x256xf32, #tpu.memory_space<vmem>>, vector<1x256xf32>
    %c0_27 = arith.constant 0 : index
    %c0_28 = arith.constant 0 : index
    %46 = vector.load %arg13[%c0_27, %c0_28] : memref<1x256xf32, #tpu.memory_space<vmem>>, vector<1x256xf32>
    %47 = arith.truncf %43 : vector<160x128xf32> to vector<160x128xbf16>
    %cst_29 = arith.constant dense<0.000000e+00> : vector<160x256xf32>
    %48 = tpu.matmul %47, %44, %cst_29 {dimension_numbers = #tpu.dot_dimension_numbers<[1], [0], [0], [1], [0, 0, 1, 1], [], []>} : vector<160x128xbf16>, vector<128x256xbf16>, vector<160x256xf32> -> vector<160x256xf32>
    %49 = vector.broadcast %45 : vector<1x256xf32> to vector<160x256xf32>
    %50 = arith.mulf %48, %49 : vector<160x256xf32>
    %51 = vector.broadcast %46 : vector<1x256xf32> to vector<160x256xf32>
    %52 = arith.addf %50, %51 : vector<160x256xf32>
    %cst_30 = arith.constant 0.000000e+00 : f32
    %53 = vector.broadcast %cst_30 : f32 to vector<160x256xf32>
    %54 = arith.maximumf %52, %53 : vector<160x256xf32>
    %c0_31 = arith.constant 0 : index
    %c0_32 = arith.constant 0 : index
    %55 = vector.load %arg14[%c0_31, %c0_32] : memref<256x128xbf16, #tpu.memory_space<vmem>>, vector<256x128xbf16>
    %c0_33 = arith.constant 0 : index
    %c0_34 = arith.constant 0 : index
    %56 = vector.load %arg15[%c0_33, %c0_34] : memref<1x128xf32, #tpu.memory_space<vmem>>, vector<1x128xf32>
    %c0_35 = arith.constant 0 : index
    %c0_36 = arith.constant 0 : index
    %57 = vector.load %arg16[%c0_35, %c0_36] : memref<1x128xf32, #tpu.memory_space<vmem>>, vector<1x128xf32>
    %58 = arith.truncf %54 : vector<160x256xf32> to vector<160x256xbf16>
    %cst_37 = arith.constant dense<0.000000e+00> : vector<160x128xf32>
    %59 = tpu.matmul %58, %55, %cst_37 {dimension_numbers = #tpu.dot_dimension_numbers<[1], [0], [0], [1], [0, 0, 1, 1], [], []>} : vector<160x256xbf16>, vector<256x128xbf16>, vector<160x128xf32> -> vector<160x128xf32>
    %60 = vector.broadcast %56 : vector<1x128xf32> to vector<160x128xf32>
    %61 = arith.mulf %59, %60 : vector<160x128xf32>
    %62 = vector.broadcast %57 : vector<1x128xf32> to vector<160x128xf32>
    %63 = arith.addf %61, %62 : vector<160x128xf32>
    %c0_38 = arith.constant 0 : index
    %c0_39 = arith.constant 0 : index
    %64 = vector.load %arg17[%c0_38, %c0_39] : memref<160x128xf32, #tpu.memory_space<vmem>>, vector<160x128xf32>
    tpu.vector_store %arg17[%c0_38, %c0_39], %63 {strides = array<i32>} : memref<160x128xf32, #tpu.memory_space<vmem>>, vector<160x128xf32>,
    return
  }
  func.func @transform_0(%arg0: i32) -> (i32, i32) {
    %c0_i32 = arith.constant 0 : i32
    %c0_i32_0 = arith.constant 0 : i32
    return %arg0, %c0_i32 : i32, i32
  }
  func.func @transform_1(%arg0: i32) -> (i32, i32) {
    %c0_i32 = arith.constant 0 : i32
    %c0_i32_0 = arith.constant 0 : i32
    %c0_i32_1 = arith.constant 0 : i32
    return %c0_i32, %c0_i32_0 : i32, i32
  }
  func.func @transform_2(%arg0: i32) -> (i32, i32) {
    %c0_i32 = arith.constant 0 : i32
    %c0_i32_0 = arith.constant 0 : i32
    %c0_i32_1 = arith.constant 0 : i32
    return %c0_i32, %c0_i32_0 : i32, i32
  }
  func.func @transform_3(%arg0: i32) -> (i32, i32) {
    %c0_i32 = arith.constant 0 : i32
    %c0_i32_0 = arith.constant 0 : i32
    %c0_i32_1 = arith.constant 0 : i32
    return %c0_i32, %c0_i32_0 : i32, i32
  }
  func.func @transform_4(%arg0: i32) -> (i32, i32) {
    %c0_i32 = arith.constant 0 : i32
    %c0_i32_0 = arith.constant 0 : i32
    %c0_i32_1 = arith.constant 0 : i32
    return %c0_i32, %c0_i32_0 : i32, i32
  }
  func.func @transform_5(%arg0: i32) -> (i32, i32) {
    %c0_i32 = arith.constant 0 : i32
    %c0_i32_0 = arith.constant 0 : i32
    %c0_i32_1 = arith.constant 0 : i32
    return %c0_i32, %c0_i32_0 : i32, i32
  }
  func.func @transform_6(%arg0: i32) -> (i32, i32) {
    %c0_i32 = arith.constant 0 : i32
    %c0_i32_0 = arith.constant 0 : i32
    %c0_i32_1 = arith.constant 0 : i32
    return %c0_i32, %c0_i32_0 : i32, i32
  }
  func.func @transform_7(%arg0: i32) -> (i32, i32) {
    %c0_i32 = arith.constant 0 : i32
    %c0_i32_0 = arith.constant 0 : i32
    %c0_i32_1 = arith.constant 0 : i32
    return %c0_i32, %c0_i32_0 : i32, i32
  }
  func.func @transform_8(%arg0: i32) -> (i32, i32) {
    %c0_i32 = arith.constant 0 : i32
    %c0_i32_0 = arith.constant 0 : i32
    %c0_i32_1 = arith.constant 0 : i32
    return %c0_i32, %c0_i32_0 : i32, i32
  }
  func.func @transform_9(%arg0: i32) -> (i32, i32) {
    %c0_i32 = arith.constant 0 : i32
    %c0_i32_0 = arith.constant 0 : i32
    %c0_i32_1 = arith.constant 0 : i32
    return %c0_i32, %c0_i32_0 : i32, i32
  }
  func.func @transform_10(%arg0: i32) -> (i32, i32) {
    %c0_i32 = arith.constant 0 : i32
    %c0_i32_0 = arith.constant 0 : i32
    %c0_i32_1 = arith.constant 0 : i32
    return %c0_i32, %c0_i32_0 : i32, i32
  }
  func.func @transform_11(%arg0: i32) -> (i32, i32) {
    %c0_i32 = arith.constant 0 : i32
    %c0_i32_0 = arith.constant 0 : i32
    %c0_i32_1 = arith.constant 0 : i32
    return %c0_i32, %c0_i32_0 : i32, i32
  }
  func.func @transform_12(%arg0: i32) -> (i32, i32) {
    %c0_i32 = arith.constant 0 : i32
    %c0_i32_0 = arith.constant 0 : i32
    %c0_i32_1 = arith.constant 0 : i32
    return %c0_i32, %c0_i32_0 : i32, i32
  }
  func.func @transform_13(%arg0: i32) -> (i32, i32) {
    %c0_i32 = arith.constant 0 : i32
    %c0_i32_0 = arith.constant 0 : i32
    %c0_i32_1 = arith.constant 0 : i32
    return %c0_i32, %c0_i32_0 : i32, i32
  }
  func.func @transform_14(%arg0: i32) -> (i32, i32) {
    %c0_i32 = arith.constant 0 : i32
    %c0_i32_0 = arith.constant 0 : i32
    %c0_i32_1 = arith.constant 0 : i32
    return %c0_i32, %c0_i32_0 : i32, i32
  }
  func.func @transform_15(%arg0: i32) -> (i32, i32) {
    %c0_i32 = arith.constant 0 : i32
    %c0_i32_0 = arith.constant 0 : i32
    %c0_i32_1 = arith.constant 0 : i32
    return %c0_i32, %c0_i32_0 : i32, i32
  }
  func.func @transform_16(%arg0: i32) -> (i32, i32) {
    %c0_i32 = arith.constant 0 : i32
    %c0_i32_0 = arith.constant 0 : i32
    return %arg0, %c0_i32 : i32, i32
  }
}

</mosaic_0001>

<bundles_post_ra>
// kernel: _mlp_rows_call.1
= control target key start
LH: loop header
LB: loop body
LE: loop exit
PB: predicated region body
PF: predicated region fallthrough
CT: control target
= control target key end

     0   :  { %s2648_s0 = inlined_call_operand.vmem [shape: f32[160,2], index: 0, kind: input, shape index: {}]   ;;  %s2649_s1 = inlined_call_operand.vmem [shape: bf16[2,32], index: 1, kind: input, shape index: {}]   ;;  %s2650_s2 = inlined_call_operand.vmem [shape: f32[1,32], index: 2, kind: input, shape index: {}]   ;;  %s2651_s3 = inlined_call_operand.vmem [shape: f32[1,32], index: 3, kind: input, shape index: {}]   ;;  %s2652_s4 = inlined_call_operand.vmem [shape: bf16[32,64], index: 4, kind: input, shape index: {}]   ;;  %s2653_s5 = inlined_call_operand.vmem [shape: f32[1,64], index: 5, kind: input, shape index: {}]   ;;  %s2654_s6 = inlined_call_operand.vmem [shape: f32[1,64], index: 6, kind: input, shape index: {}]   ;;  %s2655_s7 = inlined_call_operand.vmem [shape: bf16[64,128], index: 7, kind: input, shape index: {}]   ;;  %s2656_s8 = inlined_call_operand.vmem [shape: f32[1,128], index: 8, kind: input, shape index: {}]   ;;  %s2657_s9 = inlined_call_operand.vmem [shape: f32[1,128], index: 9, kind: input, shape index: {}]   ;;  %s2658_s10 = inlined_call_operand.vmem [shape: bf16[128,256], index: 10, kind: input, shape index: {}]   ;;  %s2659_s11 = inlined_call_operand.vmem [shape: f32[1,256], index: 11, kind: input, shape index: {}]   ;;  %s2660_s12 = inlined_call_operand.vmem [shape: f32[1,256], index: 12, kind: input, shape index: {}]   ;;  %s2661_s13 = inlined_call_operand.hbm [shape: bf16[256,128], index: 13, kind: input, shape index: {}]   ;;  %s2662_s14 = inlined_call_operand.vmem [shape: f32[1,128], index: 14, kind: input, shape index: {}]   ;;  %s2663_s15 = inlined_call_operand.vmem [shape: f32[1,128], index: 15, kind: input, shape index: {}]   ;;  %s2664_s16 = inlined_call_operand.hbm [shape: f32[160,128], index: 16, kind: output, shape index: {}]  }
   0x1   :  { %2666 = sst [smem:[#allocation8_spill]] %s2648_s0 }
   0x2   :  { %21 = vsyncpa [#allocation3], 0 }
   0x3   :  { %22 = vsyncpa [#allocation4], 0  ;;  %s1999_s21 = smov [#allocation2]   ;;  %s1951_s25 = scalar_lea.hbm %s2661_s13, 2048 }
   0x4   :  { %s54_s22 = sshll.u32 %s1999_s21, 4  ;;  %p1952_p0 = scmp.ne.s32.totalorder %s2661_s13, %s1951_s25  ;;  %s55_s22 = int_to_ptr.vmem [resolvable:$true] %s54_s22 }
   0x5   :  { %p1955_p1 = scmp.lt.u32.totalorder %s1951_s25, %s2661_s13 }
   0x7   :  { %p1957_p2 = pnand %p1955_p1, %p1952_p0 }
   0x9   :  { %1960 = shalt.err (!%p1957_p2)
}
   0xa   :  { %s1961_s30 = scalar_lea.vmem %s55_s22, 2048  ;;  %p1966_p4 = scmp.lt.s32.totalorder %s55_s22, %s55_s22 }
   0xb   :  { %p1962_p3 = scmp.ne.s32.totalorder %s55_s22, %s1961_s30  ;;  %p1967_p5 = scmp.lt.s32.totalorder %s1961_s30, %s1961_s30 }
   0xd   :  { %p1968_p6 = por %p1967_p5, %p1966_p4 }
   0xf   :  { %p1969_p7 = pnand %p1968_p6, %p1962_p3 }
  0x11   :  { %1972 = shalt.err (!%p1969_p7)
}
  0x12   :  { %s2000_s0 = smov 64   ;;  %s2001_s17 = smov 4  }
  0x13   :  { %60 = dma.hbm_to_vmem [thread:$0]  %s2661_s13, 2048, %s55_s22, [#allocation3], %s2000_s0, %s2000_s0, %s2001_s17  }
  0x14   :  { %1995 = dma.done.wait [#allocation3], 2048  }
  0x15   :  { %1996 = vsyncadd [#allocation3], 4294965248  ;;  %v2002_v0 = vmov 1   ;;  %v2003_v1 = vmov 0   ;;  %s2667_s23 = sld [smem:[#allocation8_spill]]  ;;  %v1905_v8 = vld [vmem:[%s2652_s4] sm:$0xff]   ;;  %v193_v24 = vlaneseq }
  0x16   :  { %1881 = vset.pattern.permute.xlu1 %v2002_v0  ;;  %1880 = vset.pattern.permute.xlu0 %v2003_v1  ;;  %v1906_v10 = vld [vmem:[%s2652_s4 + $0x8] sm:$0xff]   ;;  %v89_v26 = vld [vmem:[%s2649_s1] sm:$0x1]  ;;  %vm441_vm0 = vcmask 261120   ;;  %vm701_vm1 = vcmask 523264  }
  0x17   :  { %1820 = vmatprep.subr.bf16.mxu0 %v1905_v8  ;;  %v194_v25 = vshrl.u32 %v193_v24, 7  ;;  %v92_v27 = vunpack.c.l.bf16 %v89_v26  ;;  %v1907_v30 = vld [vmem:[%s2655_s7] sm:$0xff]  }
  0x18   :  { %1821 = vmatpush3.bf16.msra.mxu0 %v1905_v8  ;;  %1844 = vmatprep.subr.bf16.mxu1 %v1907_v30  ;;  %v2216_v37 = vld [vmem:[%s2650_s2] ss:$0 sm:$0xff] }
  0x19   :  { %1822 = vmatprep.subr.bf16.mxu0 %v1906_v10  ;;  %v2198_v28 = vsub.s32 1, %v194_v25  ;;  %v2200_v29 = vsub.s32 0, %v194_v25  ;;  %1845 = vmatpush3.bf16.msra.mxu1 %v1907_v30  ;;  %v2224_v44 = vld [vmem:[%s2651_s3] ss:$0 sm:$0xff] }
  0x1b   :  { %v69_v2 = vld [vmem:[%s2667_s23] sm:$0xff]  ;;  %v70_v3 = vld [vmem:[%s2667_s23 + $0x8] sm:$0xff]  ;;  %v71_v4 = vld [vmem:[%s2667_s23 + $0x10] sm:$0xff]  ;;  %v2206_v31 = vrot.slane %v92_v27, %v2198_v28  ;;  %v2209_v32 = vrot.slane %v92_v27, %v2200_v29 }
  0x1c   :  { %218 = vperm.xlu1 %1881, %v69_v2   ;;  %95 = vperm.xlu0 %1880, %v69_v2   ;;  %v72_v5 = vld [vmem:[%s2667_s23 + $0x18] sm:$0xff]  ;;  %v75_v6 = vld [vmem:[%s2667_s23 + $0x30] sm:$0xff]  ;;  %v73_v7 = vld [vmem:[%s2667_s23 + $0x20] sm:$0xff] }
  0x1d   :  { %v74_v9 = vld [vmem:[%s2667_s23 + $0x28] sm:$0xff]  ;;  %1823 = vmatpush3.bf16.msra.mxu0 %v1906_v10  ;;  %v76_v12 = vld [vmem:[%s2667_s23 + $0x38] sm:$0xff]  ;;  %v79_v13 = vld [vmem:[%s2667_s23 + $0x50] sm:$0xff] }
  0x1e   :  { %v78_v11 = vld [vmem:[%s2667_s23 + $0x48] sm:$0xff]  ;;  %v77_v14 = vld [vmem:[%s2667_s23 + $0x40] sm:$0xff]  ;;  %v83_v15 = vld [vmem:[%s2667_s23 + $0x70] sm:$0xff] }
  0x1f   :  { %v82_v16 = vld [vmem:[%s2667_s23 + $0x68] sm:$0xff]  ;;  %v80_v18 = vld [vmem:[%s2667_s23 + $0x58] sm:$0xff]  ;;  %v87_v19 = vld [vmem:[%s2667_s23 + $0x90] sm:$0xff] }
  0x20   :  { %222 = vperm.xlu1 %1881, %v70_v3   ;;  %100 = vperm.xlu0 %1880, %v70_v3   ;;  %v86_v17 = vld [vmem:[%s2667_s23 + $0x88] sm:$0xff]  ;;  %v81_v20 = vld [vmem:[%s2667_s23 + $0x60] sm:$0xff]  ;;  %v84_v21 = vld [vmem:[%s2667_s23 + $0x78] sm:$0xff] }
  0x21   :  { %v85_v22 = vld [vmem:[%s2667_s23 + $0x80] sm:$0xff]  ;;  %v88_v23 = vld [vmem:[%s2667_s23 + $0x98] sm:$0xff] }
  0x24   :  { %1882 = vset.pattern.permute.xlu1 %v2003_v1  ;;  %105 = vperm.xlu0 %1880, %v71_v4  }
  0x25   :  { %110 = vperm.xlu1 %1882, %v72_v5  }
  0x28   :  { %1883 = vset.pattern.permute.xlu0 %v2002_v0 }
  0x29   :  { %1884 = vset.pattern.permute.xlu1 %v2002_v0  ;;  %226 = vperm.xlu0 %1883, %v71_v4  }
  0x2a   :  { %230 = vperm.xlu1 %1884, %v72_v5  }
  0x2d   :  { %242 = vperm.xlu0 %1883, %v75_v6  }
  0x2e   :  { %1885 = vset.pattern.permute.xlu1 %v2003_v1 }
  0x2f   :  { %115 = vperm.xlu1 %1885, %v73_v7  }
  0x31   :  { %1888 = vset.pattern.permute.xlu0 %v2003_v1 }
  0x32   :  { %120 = vperm.xlu0 %1888, %v74_v9  }
  0x33   :  { %1886 = vset.pattern.permute.xlu1 %v2002_v0 }
  0x34   :  { %234 = vperm.xlu1 %1886, %v73_v7  }
  0x36   :  { %125 = vperm.xlu0 %1888, %v75_v6  }
  0x38   :  { %238 = vperm.xlu1 %1886, %v74_v9  }
  0x3a   :  { %140 = vperm.xlu0 %1888, %v78_v11  }
  0x3c   :  { %1887 = vset.pattern.permute.xlu1 %v2003_v1 }
  0x3d   :  { %130 = vperm.xlu1 %1887, %v76_v12  }
  0x3e   :  { %145 = vperm.xlu0 %1888, %v79_v13  }
  0x41   :  { %1889 = vset.pattern.permute.xlu1 %v2002_v0 }
  0x42   :  { %246 = vperm.xlu1 %1889, %v76_v12   ;;  %1893 = vset.pattern.permute.xlu0 %v2002_v0 }
  0x43   :  { %258 = vperm.xlu0 %1893, %v79_v13  }
  0x46   :  { %1890 = vset.pattern.permute.xlu1 %v2003_v1 }
  0x47   :  { %135 = vperm.xlu1 %1890, %v77_v14   ;;  %274 = vperm.xlu0 %1893, %v83_v15  }
  0x4b   :  { %1891 = vset.pattern.permute.xlu1 %v2002_v0  ;;  %1898 = vset.pattern.permute.xlu0 %v2003_v1 }
  0x4c   :  { %250 = vperm.xlu1 %1891, %v77_v14   ;;  %160 = vperm.xlu0 %1898, %v82_v16  }
  0x50   :  { %254 = vperm.xlu1 %1891, %v78_v11   ;;  %165 = vperm.xlu0 %1898, %v83_v15  }
  0x54   :  { %1892 = vset.pattern.permute.xlu1 %v2003_v1  ;;  %180 = vperm.xlu0 %1898, %v86_v17  }
  0x55   :  { %150 = vperm.xlu1 %1892, %v80_v18  }
  0x58   :  { %185 = vperm.xlu0 %1898, %v87_v19  }
  0x59   :  { %1894 = vset.pattern.permute.xlu1 %v2002_v0 }
  0x5a   :  { %262 = vperm.xlu1 %1894, %v80_v18  }
  0x5c   :  { %1903 = vset.pattern.permute.xlu0 %v2002_v0 }
  0x5d   :  { %290 = vperm.xlu0 %1903, %v87_v19  }
  0x5e   :  { %1895 = vset.pattern.permute.xlu1 %v2003_v1 }
  0x5f   :  { %155 = vperm.xlu1 %1895, %v81_v20  }
  0x63   :  { %1896 = vset.pattern.permute.xlu1 %v2002_v0 }
  0x64   :  { %266 = vperm.xlu1 %1896, %v81_v20  }
  0x68   :  { %270 = vperm.xlu1 %1896, %v82_v16  }
  0x6c   :  { %1897 = vset.pattern.permute.xlu1 %v2003_v1 }
  0x6d   :  { %170 = vperm.xlu1 %1897, %v84_v21  }
  0x71   :  { %1899 = vset.pattern.permute.xlu1 %v2002_v0 }
  0x72   :  { %278 = vperm.xlu1 %1899, %v84_v21  }
  0x76   :  { %1900 = vset.pattern.permute.xlu1 %v2003_v1 }
  0x77   :  { %175 = vperm.xlu1 %1900, %v85_v22  }
  0x7b   :  { %1901 = vset.pattern.permute.xlu1 %v2002_v0 }
  0x7c   :  { %282 = vperm.xlu1 %1901, %v85_v22  }
  0x80   :  { %286 = vperm.xlu1 %1901, %v86_v17  }
  0x84   :  { %1902 = vset.pattern.permute.xlu1 %v2003_v1 }
  0x85   :  { %190 = vperm.xlu1 %1902, %v88_v23  }
  0x89   :  { %1904 = vset.pattern.permute.xlu1 %v2002_v0 }
  0x8a   :  { %294 = vperm.xlu1 %1904, %v88_v23  }
  0x9b   :  { %v219_v33 = vpop.permute.xlu1 %218  ;;  %v96_v34 = vpop.permute.xlu0 %95 }
  0x9c   :  { %v301_v35 = vmul.f32 %v2206_v31, %v219_v33  ;;  %v197_v36 = vmul.f32 %v2209_v32, %v96_v34 }
  0x9e   :  { %v321_v38 = vadd.f32 %v301_v35, %v197_v36 }
  0x9f   :  { %v223_v39 = vpop.permute.xlu1 %222  ;;  %v101_v40 = vpop.permute.xlu0 %100 }
  0xa0   :  { %v347_v41 = vmul.f32 %v2216_v37, %v321_v38  ;;  %v302_v42 = vmul.f32 %v2206_v31, %v223_v39  ;;  %v198_v43 = vmul.f32 %v2209_v32, %v101_v40 }
  0xa2   :  { %v322_v45 = vadd.f32 %v302_v42, %v198_v43  ;;  %v373_v49 = vadd.f32 %v2224_v44, %v347_v41 }
  0xa3   :  { %v106_v46 = vpop.permute.xlu0 %105 }
  0xa4   :  { %v348_v47 = vmul.f32 %v2216_v37, %v322_v45  ;;  %v111_v48 = vpop.permute.xlu1 %110  ;;  %v199_v51 = vmul.f32 %v2209_v32, %v106_v46  ;;  %v393_v53 = vmax.f32 %v373_v49, 0.0 }
  0xa5   :  { %v200_v57 = vmul.f32 %v2209_v32, %v111_v48 }
  0xa6   :  { %v374_v50 = vadd.f32 %v2224_v44, %v348_v47 }
  0xa8   :  { %v227_v52 = vpop.permute.xlu0 %226  ;;  %v394_v54 = vmax.f32 %v374_v50, 0.0 }
  0xa9   :  { %v231_v55 = vpop.permute.xlu1 %230  ;;  %v303_v56 = vmul.f32 %v2206_v31, %v227_v52 }
  0xaa   :  { %v304_v58 = vmul.f32 %v2206_v31, %v231_v55  ;;  %v419_v59 = vpack.c.bf16 %v394_v54, %v393_v53 }
  0xab   :  { %v323_v60 = vadd.f32 %v303_v56, %v199_v51 }
  0xac   :  { %v324_v61 = vadd.f32 %v304_v58, %v200_v57  ;;  %1824 = vmatprep.mubr.msk.bf16.mxu0 %vm441_vm0, %v419_v59  ;;  %v243_v62 = vpop.permute.xlu0 %242 }
  0xad   :  { %v349_v63 = vmul.f32 %v2216_v37, %v323_v60  ;;  %v307_v17 = vmul.f32 %v2206_v31, %v243_v62 }
  0xae   :  { %v350_v0 = vmul.f32 %v2216_v37, %v324_v61  ;;  %v116_v2 = vpop.permute.xlu1 %115 }
  0xaf   :  { %v375_v3 = vadd.f32 %v2224_v44, %v349_v63  ;;  %v201_v9 = vmul.f32 %v2209_v32, %v116_v2 }
  0xb0   :  { %v376_v4 = vadd.f32 %v2224_v44, %v350_v0 }
  0xb1   :  { %v395_v5 = vmax.f32 %v375_v3, 0.0  ;;  %v121_v6 = vpop.permute.xlu0 %120 }
  0xb2   :  { %v396_v7 = vmax.f32 %v376_v4, 0.0  ;;  %v202_v14 = vmul.f32 %v2209_v32, %v121_v6 }
  0xb3   :  { %v235_v8 = vpop.permute.xlu1 %234 }
  0xb4   :  { %v305_v10 = vmul.f32 %v2206_v31, %v235_v8  ;;  %v420_v11 = vpack.c.bf16 %v396_v7, %v395_v5 }
  0xb5   :  { %v126_v12 = vpop.permute.xlu0 %125 }
  0xb6   :  { %v325_v13 = vadd.f32 %v305_v10, %v201_v9  ;;  %1825 = vmatmul.mubr.msk.bf16.vlgmr.msra.gmra.mrb[0].mxu0 %vm441_vm0, %v420_v11  ;;  %v203_v19 = vmul.f32 %v2209_v32, %v126_v12 }
  0xb7   :  { %v239_v15 = vpop.permute.xlu1 %238 }
  0xb8   :  { %v351_v16 = vmul.f32 %v2216_v37, %v325_v13  ;;  %v306_v18 = vmul.f32 %v2206_v31, %v239_v15  ;;  %v327_v24 = vadd.f32 %v307_v17, %v203_v19 }
  0xb9   :  { %v141_v38 = vpop.permute.xlu0 %140 }
  0xba   :  { %v326_v20 = vadd.f32 %v306_v18, %v202_v14  ;;  %v377_v21 = vadd.f32 %v2224_v44, %v351_v16  ;;  %v353_v30 = vmul.f32 %v2216_v37, %v327_v24  ;;  %v206_v53 = vmul.f32 %v2209_v32, %v141_v38 }
  0xbc   :  { %v352_v22 = vmul.f32 %v2216_v37, %v326_v20  ;;  %v131_v23 = vpop.permute.xlu1 %130  ;;  %v397_v26 = vmax.f32 %v377_v21, 0.0  ;;  %v379_v40 = vadd.f32 %v2224_v44, %v353_v30 }
  0xbd   :  { %v204_v34 = vmul.f32 %v2209_v32, %v131_v23  ;;  %v146_v46 = vpop.permute.xlu0 %145 }
  0xbe   :  { %v378_v25 = vadd.f32 %v2224_v44, %v352_v22  ;;  %v399_v45 = vmax.f32 %v379_v40, 0.0  ;;  %v207_v59 = vmul.f32 %v2209_v32, %v146_v46 }
  0xc0   :  { %v398_v27 = vmax.f32 %v378_v25, 0.0 }
  0xc1   :  { %v247_v33 = vpop.permute.xlu1 %246 }
  0xc2   :  { %v308_v35 = vmul.f32 %v2206_v31, %v247_v33  ;;  %v421_v36 = vpack.c.bf16 %v398_v27, %v397_v26  ;;  %v259_v55 = vpop.permute.xlu0 %258 }
  0xc3   :  { %v311_v60 = vmul.f32 %v2206_v31, %v259_v55 }
  0xc4   :  { %v328_v39 = vadd.f32 %v308_v35, %v204_v34  ;;  %1828 = vmatprep.mubr.msk.bf16.mxu0 %vm441_vm0, %v421_v36 }
  0xc5   :  { %v331_v2 = vadd.f32 %v311_v60, %v207_v59 }
  0xc6   :  { %v354_v41 = vmul.f32 %v2216_v37, %v328_v39  ;;  %v136_v42 = vpop.permute.xlu1 %135  ;;  %v275_v10 = vpop.permute.xlu0 %274 }
  0xc7   :  { %v205_v49 = vmul.f32 %v2209_v32, %v136_v42  ;;  %v357_v7 = vmul.f32 %v2216_v37, %v331_v2  ;;  %v315_v33 = vmul.f32 %v2206_v31, %v275_v10 }
  0xc8   :  { %v380_v43 = vadd.f32 %v2224_v44, %v354_v41 }
  0xc9   :  { %v383_v12 = vadd.f32 %v2224_v44, %v357_v7 }
  0xca   :  { %v400_v47 = vmax.f32 %v380_v43, 0.0 }
  0xcb   :  { %v251_v48 = vpop.permute.xlu1 %250  ;;  %v161_v16 = vpop.permute.xlu0 %160  ;;  %v403_v17 = vmax.f32 %v383_v12, 0.0 }
  0xcc   :  { %v309_v50 = vmul.f32 %v2206_v31, %v251_v48  ;;  %v422_v51 = vpack.c.bf16 %v400_v47, %v399_v45  ;;  %v210_v24 = vmul.f32 %v2209_v32, %v161_v16  ;;  %v1908_v16 = vld [vmem:[%s2655_s7 + $0x8] sm:$0xff]  }
  0xcd   :  { %1846 = vmatprep.subr.bf16.mxu1 %v1908_v16 }
  0xce   :  { %v329_v52 = vadd.f32 %v309_v50, %v205_v49  ;;  %1829 = vmatmul.mubr.msk.bf16.gmra.mrb[4].mxu0 %vm441_vm0, %v422_v51  ;;  %1847 = vmatpush3.bf16.msra.mxu1 %v1908_v16 }
  0xcf   :  { %v255_v54 = vpop.permute.xlu1 %254  ;;  %v166_v26 = vpop.permute.xlu0 %165 }
  0xd0   :  { %v355_v56 = vmul.f32 %v2216_v37, %v329_v52  ;;  %v310_v57 = vmul.f32 %v2206_v31, %v255_v54  ;;  %v211_v35 = vmul.f32 %v2209_v32, %v166_v26 }
  0xd2   :  { %v330_v58 = vadd.f32 %v310_v57, %v206_v53  ;;  %v381_v61 = vadd.f32 %v2224_v44, %v355_v56  ;;  %v335_v41 = vadd.f32 %v315_v33, %v211_v35  ;;  %v1916_v33 = vld [vmem:[%s2658_s10 + $0x14] ss:$8 sps:$4 sm:$0xff]   ;;  %v1919_v35 = vld [vmem:[%s2658_s10 + $0x24] ss:$8 sps:$4 sm:$0xff]  }
  0xd3   :  { %v181_v50 = vpop.permute.xlu0 %180 }
  0xd4   :  { %v356_v62 = vmul.f32 %v2216_v37, %v330_v58  ;;  %v151_v63 = vpop.permute.xlu1 %150  ;;  %v401_v3 = vmax.f32 %v381_v61, 0.0  ;;  %v361_v46 = vmul.f32 %v2216_v37, %v335_v41  ;;  %v1923_v41 = vld [vmem:[%s2658_s10 + $0x40] ss:$8 sps:$4 sm:$0xff]  }
  0xd5   :  { %v208_v6 = vmul.f32 %v2209_v32, %v151_v63 }
  0xd6   :  { %v382_v0 = vadd.f32 %v2224_v44, %v356_v62  ;;  %v387_v52 = vadd.f32 %v2224_v44, %v361_v46 }
  0xd7   :  { %v186_v56 = vpop.permute.xlu0 %185 }
  0xd8   :  { %v402_v4 = vmax.f32 %v382_v0, 0.0  ;;  %v407_v57 = vmax.f32 %v387_v52, 0.0 }
  0xd9   :  { %v263_v5 = vpop.permute.xlu1 %262 }
  0xda   :  { %v312_v8 = vmul.f32 %v2206_v31, %v263_v5  ;;  %v423_v9 = vpack.c.bf16 %v402_v4, %v401_v3  ;;  %v214_v3 = vmul.f32 %v2209_v32, %v181_v50 }
  0xdc   :  { %v332_v11 = vadd.f32 %v312_v8, %v208_v6  ;;  %1832 = vmatprep.mubr.msk.bf16.mxu0 %vm441_vm0, %v423_v9  ;;  %v291_v0 = vpop.permute.xlu0 %290  ;;  %v215_v6 = vmul.f32 %v2209_v32, %v186_v56 }
  0xdd   :  { %v319_v7 = vmul.f32 %v2206_v31, %v291_v0 }
  0xde   :  { %v358_v13 = vmul.f32 %v2216_v37, %v332_v11  ;;  %v156_v14 = vpop.permute.xlu1 %155 }
  0xdf   :  { %v209_v20 = vmul.f32 %v2209_v32, %v156_v14  ;;  %v339_v12 = vadd.f32 %v319_v7, %v215_v6 }
  0xe0   :  { %v384_v15 = vadd.f32 %v2224_v44, %v358_v13 }
  0xe2   :  { %v404_v18 = vmax.f32 %v384_v15, 0.0 }
  0xe3   :  { %v267_v19 = vpop.permute.xlu1 %266 }
  0xe4   :  { %v313_v21 = vmul.f32 %v2206_v31, %v267_v19  ;;  %v424_v22 = vpack.c.bf16 %v404_v18, %v403_v17  ;;  %v365_v18 = vmul.f32 %v2216_v37, %v339_v12 }
  0xe6   :  { %v333_v23 = vadd.f32 %v313_v21, %v209_v20  ;;  %1833 = vmatmul.mubr.msk.bf16.gmra.mrb[8].mxu0 %vm441_vm0, %v424_v22 }
  0xe7   :  { %v271_v25 = vpop.permute.xlu1 %270 }
  0xe8   :  { %v359_v27 = vmul.f32 %v2216_v37, %v333_v23  ;;  %v314_v30 = vmul.f32 %v2206_v31, %v271_v25  ;;  %v1909_v23 = vld [vmem:[%s2655_s7 + $0x10] sm:$0xff]  }
  0xe9   :  { %1848 = vmatprep.subr.bf16.mxu1 %v1909_v23 }
  0xea   :  { %v334_v34 = vadd.f32 %v314_v30, %v210_v24  ;;  %v385_v36 = vadd.f32 %v2224_v44, %v359_v27  ;;  %v391_v24 = vadd.f32 %v2224_v44, %v365_v18  ;;  %1849 = vmatpush3.bf16.msra.mxu1 %v1909_v23 }
  0xec   :  { %v360_v38 = vmul.f32 %v2216_v37, %v334_v34  ;;  %v171_v39 = vpop.permute.xlu1 %170  ;;  %v405_v42 = vmax.f32 %v385_v36, 0.0  ;;  %v411_v26 = vmax.f32 %v391_v24, 0.0  ;;  %v1914_v34 = vld [vmem:[%s2658_s10 + $0x10] ss:$8 sps:$4 sm:$0xff]   ;;  %v1917_v36 = vld [vmem:[%s2658_s10 + $0x20] ss:$8 sps:$4 sm:$0xff]  }
  0xed   :  { %v212_v47 = vmul.f32 %v2209_v32, %v171_v39  ;;  %v1920_v39 = vld [vmem:[%s2658_s10 + $0x30] ss:$8 sps:$4 sm:$0xff]  }
  0xee   :  { %v386_v40 = vadd.f32 %v2224_v44, %v360_v38  ;;  %v1922_v38 = vld [vmem:[%s2658_s10 + $0x34] ss:$8 sps:$4 sm:$0xff]  }
  0xf0   :  { %v406_v43 = vmax.f32 %v386_v40, 0.0  ;;  %v1925_v40 = vld [vmem:[%s2658_s10 + $0x44] ss:$8 sps:$4 sm:$0xff]  }
  0xf1   :  { %v279_v45 = vpop.permute.xlu1 %278 }
  0xf2   :  { %v316_v48 = vmul.f32 %v2206_v31, %v279_v45  ;;  %v425_v49 = vpack.c.bf16 %v406_v43, %v405_v42  ;;  %v2354_v42 = vld [vmem:[%s2653_s5] ss:$0 sm:$0xff] }
  0xf3   :  { %v2359_v43 = vld [vmem:[%s2654_s6] ss:$0 sm:$0xff] }
  0xf4   :  { %v336_v51 = vadd.f32 %v316_v48, %v212_v47  ;;  %1836 = vmatprep.mubr.msk.bf16.mxu0 %vm441_vm0, %v425_v49 }
  0xf6   :  { %v362_v53 = vmul.f32 %v2216_v37, %v336_v51  ;;  %v176_v54 = vpop.permute.xlu1 %175 }
  0xf7   :  { %v213_v60 = vmul.f32 %v2209_v32, %v176_v54 }
  0xf8   :  { %v388_v55 = vadd.f32 %v2224_v44, %v362_v53 }
  0xfa   :  { %v408_v58 = vmax.f32 %v388_v55, 0.0 }
  0xfb   :  { %v283_v59 = vpop.permute.xlu1 %282 }
  0xfc   :  { %v317_v61 = vmul.f32 %v2206_v31, %v283_v59  ;;  %v426_v62 = vpack.c.bf16 %v408_v58, %v407_v57 }
  0xfe   :  { %v337_v63 = vadd.f32 %v317_v61, %v213_v60  ;;  %1837 = vmatmul.mubr.msk.bf16.gmra.mrb[12].mxu0 %vm441_vm0, %v426_v62 }
  0xff   :  { %v287_v2 = vpop.permute.xlu1 %286 }
 0x100   :  { %v363_v4 = vmul.f32 %v2216_v37, %v337_v63  ;;  %v318_v5 = vmul.f32 %v2206_v31, %v287_v2 }
 0x102   :  { %v338_v8 = vadd.f32 %v318_v5, %v214_v3  ;;  %v389_v9 = vadd.f32 %v2224_v44, %v363_v4 }
 0x104   :  { %v364_v10 = vmul.f32 %v2216_v37, %v338_v8  ;;  %v191_v11 = vpop.permute.xlu1 %190  ;;  %v409_v14 = vmax.f32 %v389_v9, 0.0 }
 0x105   :  { %v216_v19 = vmul.f32 %v2209_v32, %v191_v11 }
 0x106   :  { %v390_v13 = vadd.f32 %v2224_v44, %v364_v10 }
 0x108   :  { %v410_v15 = vmax.f32 %v390_v13, 0.0 }
 0x109   :  { %v295_v17 = vpop.permute.xlu1 %294 }
 0x10a   :  { %v320_v20 = vmul.f32 %v2206_v31, %v295_v17  ;;  %v427_v21 = vpack.c.bf16 %v410_v15, %v409_v14  ;;  %v1910_v31 = vld [vmem:[%s2655_s7 + $0x18] sm:$0xff]  }
 0x10b   :  { %1850 = vmatprep.subr.bf16.mxu1 %v1910_v31 }
 0x10c   :  { %v340_v22 = vadd.f32 %v320_v20, %v216_v19  ;;  %1840 = vmatprep.mubr.msk.bf16.mxu0 %vm441_vm0, %v427_v21  ;;  %1851 = vmatpush3.bf16.msra.mxu1 %v1910_v31 }
 0x10e   :  { %v366_v25 = vmul.f32 %v2216_v37, %v340_v22  ;;  %v1911_v37 = vld [vmem:[%s2658_s10] ss:$8 sps:$4 sm:$0xff]  }
 0x110   :  { %v392_v32 = vadd.f32 %v2224_v44, %v366_v25  ;;  %v1913_v44 = vld [vmem:[%s2658_s10 + $0x4] ss:$8 sps:$4 sm:$0xff]  }
 0x111   :  { %1025 = vmatprep.subr.bf16.mxu0 %v1913_v44 }
 0x112   :  { %v412_v27 = vmax.f32 %v392_v32, 0.0  ;;  %1026 = vmatpush1.bf16.msra.mxu0 %v1911_v37 }
 0x113   :  { %1027 = vmatprep.subr.bf16.mxu0 %v1916_v33 }
 0x114   :  { %v428_v30 = vpack.c.bf16 %v412_v27, %v411_v26 }
 0x116   :  { %1841 = vmatmul.mubr.msk.bf16.gmra.mrb[16].mxu0 %vm441_vm0, %v428_v30 }
 0x117   :  { %1057 = vmatprep.mubr.bf16.mxu0 %v2003_v1  ;;  %1028 = vmatpush1.bf16.msra.mxu0 %v1914_v34 }
 0x118   :  { %1029 = vmatprep.subr.bf16.mxu0 %v1919_v35 }
 0x11b   :  { %1030 = vmatpush1.bf16.msra.mxu0 %v1917_v36 }
 0x11c   :  { %1031 = vmatprep.subr.bf16.mxu0 %v1922_v38 }
 0x11f   :  { %1032 = vmatpush1.bf16.msra.mxu0 %v1920_v39 }
 0x120   :  { %1033 = vmatprep.subr.bf16.mxu0 %v1925_v40 }
 0x123   :  { %1034 = vmatpush1.bf16.msra.mxu0 %v1923_v41 }
 0x189   :  { %v1826_v45 = vpop.f32.mrb[0].mxu0 }
 0x18a   :  { %v593_v46 = vmul.f32 %v1826_v45, %v2354_v42  ;;  %v506_v47 = vpop.f32.mrb[1].mxu0 }
 0x18b   :  { %v591_v48 = vmul.f32 %v2354_v42, %v506_v47  ;;  %v1827_v49 = vpop.f32.mrb[2].mxu0 }
 0x18c   :  { %v619_v50 = vadd.f32 %v2359_v43, %v593_v46  ;;  %v594_v51 = vmul.f32 %v1827_v49, %v2354_v42  ;;  %v509_v52 = vpop.f32.mrb[3].mxu0 }
 0x18d   :  { %v617_v53 = vadd.f32 %v2359_v43, %v591_v48  ;;  %v592_v54 = vmul.f32 %v2354_v42, %v509_v52 }
 0x18e   :  { %v620_v55 = vadd.f32 %v2359_v43, %v594_v51  ;;  %v639_v57 = vmax.f32 %v619_v50, 0.0 }
 0x18f   :  { %v618_v56 = vadd.f32 %v2359_v43, %v592_v54  ;;  %v637_v59 = vmax.f32 %v617_v53, 0.0 }
 0x190   :  { %v640_v58 = vmax.f32 %v620_v55, 0.0 }
 0x191   :  { %v638_v60 = vmax.f32 %v618_v56, 0.0 }
 0x192   :  { %v668_v61 = vpack.c.bf16 %v640_v58, %v639_v57  ;;  %v1928_v58 = vld [vmem:[%s2658_s10 + $0x54] ss:$8 sps:$4 sm:$0xff]  }
 0x193   :  { %v667_v62 = vpack.c.bf16 %v638_v60, %v637_v59  ;;  %v1926_v59 = vld [vmem:[%s2658_s10 + $0x50] ss:$8 sps:$4 sm:$0xff]   ;;  %1035 = vmatprep.subr.bf16.mxu0 %v1928_v58 }
 0x194   :  { %1036 = vmatpush1.bf16.msra.mxu0 %v1926_v59 }
 0x195   :  { %1852 = vmatprep.mubr.msk.bf16.mxu1 %vm701_vm1, %v667_v62 }
 0x196   :  { %1853 = vmatmul.mubr.msk.bf16.vlgmr.msra.gmra.mrb[0].mxu1 %vm701_vm1, %v668_v61 }
 0x1a1   :  { %v1830_v63 = vpop.f32.mrb[4].mxu0 }
 0x1a2   :  { %v597_v0 = vmul.f32 %v1830_v63, %v2354_v42  ;;  %v522_v2 = vpop.f32.mrb[5].mxu0 }
 0x1a3   :  { %v595_v3 = vmul.f32 %v2354_v42, %v522_v2  ;;  %v1831_v4 = vpop.f32.mrb[6].mxu0  ;;  %v1931_v2 = vld [vmem:[%s2658_s10 + $0x64] ss:$8 sps:$4 sm:$0xff]  }
 0x1a4   :  { %v623_v5 = vadd.f32 %v2359_v43, %v597_v0  ;;  %v598_v6 = vmul.f32 %v1831_v4, %v2354_v42  ;;  %v525_v7 = vpop.f32.mrb[7].mxu0  ;;  %1037 = vmatprep.subr.bf16.mxu0 %v1931_v2 }
 0x1a5   :  { %v621_v8 = vadd.f32 %v2359_v43, %v595_v3  ;;  %v596_v9 = vmul.f32 %v2354_v42, %v525_v7 }
 0x1a6   :  { %v624_v10 = vadd.f32 %v2359_v43, %v598_v6  ;;  %v643_v12 = vmax.f32 %v623_v5, 0.0  ;;  %v1929_v6 = vld [vmem:[%s2658_s10 + $0x60] ss:$8 sps:$4 sm:$0xff]  }
 0x1a7   :  { %v622_v11 = vadd.f32 %v2359_v43, %v596_v9  ;;  %v641_v14 = vmax.f32 %v621_v8, 0.0  ;;  %1038 = vmatpush1.bf16.msra.mxu0 %v1929_v6 }
 0x1a8   :  { %v644_v13 = vmax.f32 %v624_v10, 0.0 }
 0x1a9   :  { %v642_v15 = vmax.f32 %v622_v11, 0.0  ;;  %v1934_v11 = vld [vmem:[%s2658_s10 + $0x74] ss:$8 sps:$4 sm:$0xff]  }
 0x1aa   :  { %v670_v16 = vpack.c.bf16 %v644_v13, %v643_v12  ;;  %1039 = vmatprep.subr.bf16.mxu0 %v1934_v11 }
 0x1ab   :  { %v669_v17 = vpack.c.bf16 %v642_v15, %v641_v14  ;;  %v1932_v14 = vld [vmem:[%s2658_s10 + $0x70] ss:$8 sps:$4 sm:$0xff]  }
 0x1ac   :  { %1040 = vmatpush1.bf16.msra.mxu0 %v1932_v14 }
 0x1ad   :  { %1856 = vmatprep.mubr.msk.bf16.mxu1 %vm701_vm1, %v669_v17 }
 0x1ae   :  { %1857 = vmatmul.mubr.msk.bf16.gmra.mrb[4].mxu1 %vm701_vm1, %v670_v16 }
 0x1b9   :  { %v1834_v18 = vpop.f32.mrb[8].mxu0 }
 0x1ba   :  { %v601_v19 = vmul.f32 %v1834_v18, %v2354_v42  ;;  %v538_v20 = vpop.f32.mrb[9].mxu0  ;;  %v1936_v18 = vld [vmem:[#allocation2] sm:$0xff]  }
 0x1bb   :  { %v599_v21 = vmul.f32 %v2354_v42, %v538_v20  ;;  %v1835_v22 = vpop.f32.mrb[10].mxu0  ;;  %v1938_v20 = vld [vmem:[#allocation2 + $0x8] sm:$0xff]  }
 0x1bc   :  { %v627_v23 = vadd.f32 %v2359_v43, %v601_v19  ;;  %v602_v24 = vmul.f32 %v1835_v22, %v2354_v42  ;;  %v541_v25 = vpop.f32.mrb[11].mxu0  ;;  %v1937_v19 = vld [vmem:[#allocation2 + $0x48] sm:$0xff]   ;;  %v1940_v22 = vld [vmem:[#allocation2 + $0x10] sm:$0xff]  }
 0x1bd   :  { %v625_v32 = vadd.f32 %v2359_v43, %v599_v21  ;;  %v600_v31 = vmul.f32 %v2354_v42, %v541_v25  ;;  %v1939_v21 = vld [vmem:[#allocation2 + $0x50] sm:$0xff]   ;;  %v1942_v25 = vld [vmem:[#allocation2 + $0x18] sm:$0xff]  }
 0x1be   :  { %v628_v26 = vadd.f32 %v2359_v43, %v602_v24  ;;  %v647_v30 = vmax.f32 %v627_v23, 0.0  ;;  %v1941_v23 = vld [vmem:[#allocation2 + $0x58] sm:$0xff]   ;;  %v2432_v24 = vld [vmem:[%s2656_s8] ss:$0 sm:$0xff] }
 0x1bf   :  { %v626_v27 = vadd.f32 %v2359_v43, %v600_v31  ;;  %v645_v44 = vmax.f32 %v625_v32, 0.0  ;;  %v2437_v32 = vld [vmem:[%s2657_s9] ss:$0 sm:$0xff] }
 0x1c0   :  { %v648_v37 = vmax.f32 %v628_v26, 0.0  ;;  %v1943_v26 = vld [vmem:[#allocation2 + $0x60] sm:$0xff]  }
 0x1c1   :  { %v646_v33 = vmax.f32 %v626_v27, 0.0 }
 0x1c2   :  { %v672_v34 = vpack.c.bf16 %v648_v37, %v647_v30 }
 0x1c3   :  { %v671_v35 = vpack.c.bf16 %v646_v33, %v645_v44 }
 0x1c5   :  { %1860 = vmatprep.mubr.msk.bf16.mxu1 %vm701_vm1, %v671_v35 }
 0x1c6   :  { %1861 = vmatmul.mubr.msk.bf16.gmra.mrb[8].mxu1 %vm701_vm1, %v672_v34 }
 0x1d1   :  { %v1838_v36 = vpop.f32.mrb[12].mxu0 }
 0x1d2   :  { %v605_v38 = vmul.f32 %v1838_v36, %v2354_v42  ;;  %v554_v39 = vpop.f32.mrb[13].mxu0  ;;  %v1944_v36 = vld [vmem:[#allocation2 + $0x20] sm:$0xff]  }
 0x1d3   :  { %v603_v40 = vmul.f32 %v2354_v42, %v554_v39  ;;  %v1839_v41 = vpop.f32.mrb[14].mxu0 }
 0x1d4   :  { %v631_v45 = vadd.f32 %v2359_v43, %v605_v38  ;;  %v606_v46 = vmul.f32 %v1839_v41, %v2354_v42  ;;  %v557_v47 = vpop.f32.mrb[15].mxu0 }
 0x1d5   :  { %v629_v48 = vadd.f32 %v2359_v43, %v603_v40  ;;  %v604_v49 = vmul.f32 %v2354_v42, %v557_v47 }
 0x1d6   :  { %v632_v50 = vadd.f32 %v2359_v43, %v606_v46  ;;  %v651_v52 = vmax.f32 %v631_v45, 0.0 }
 0x1d7   :  { %v630_v51 = vadd.f32 %v2359_v43, %v604_v49  ;;  %v649_v54 = vmax.f32 %v629_v48, 0.0 }
 0x1d8   :  { %v652_v53 = vmax.f32 %v632_v50, 0.0 }
 0x1d9   :  { %v650_v55 = vmax.f32 %v630_v51, 0.0 }
 0x1da   :  { %v674_v56 = vpack.c.bf16 %v652_v53, %v651_v52 }
 0x1db   :  { %v673_v57 = vpack.c.bf16 %v650_v55, %v649_v54 }
 0x1dd   :  { %1864 = vmatprep.mubr.msk.bf16.mxu1 %vm701_vm1, %v673_v57 }
 0x1de   :  { %1865 = vmatmul.mubr.msk.bf16.gmra.mrb[12].mxu1 %vm701_vm1, %v674_v56 }
 0x1e9   :  { %v1842_v60 = vpop.f32.mrb[16].mxu0 }
 0x1ea   :  { %v609_v61 = vmul.f32 %v1842_v60, %v2354_v42  ;;  %v570_v62 = vpop.f32.mrb[17].mxu0 }
 0x1eb   :  { %v607_v63 = vmul.f32 %v2354_v42, %v570_v62  ;;  %v1843_v0 = vpop.f32.mrb[18].mxu0 }
 0x1ec   :  { %v635_v3 = vadd.f32 %v2359_v43, %v609_v61  ;;  %v610_v4 = vmul.f32 %v1843_v0, %v2354_v42  ;;  %v573_v5 = vpop.f32.mrb[19].mxu0 }
 0x1ed   :  { %v633_v7 = vadd.f32 %v2359_v43, %v607_v63  ;;  %v608_v8 = vmul.f32 %v2354_v42, %v573_v5 }
 0x1ee   :  { %v636_v9 = vadd.f32 %v2359_v43, %v610_v4  ;;  %v655_v12 = vmax.f32 %v635_v3, 0.0 }
 0x1ef   :  { %v634_v10 = vadd.f32 %v2359_v43, %v608_v8  ;;  %v653_v15 = vmax.f32 %v633_v7, 0.0  ;;  %v1935_v43 = vld [vmem:[#allocation2 + $0x40] sm:$0xff]  }
 0x1f0   :  { %v656_v13 = vmax.f32 %v636_v9, 0.0  ;;  %1744 = vmatprep.subr.bf16.mxu1 %v1935_v43 }
 0x1f1   :  { %v654_v16 = vmax.f32 %v634_v10, 0.0  ;;  %1745 = vmatpush3.bf16.msra.mxu1 %v1936_v18 }
 0x1f2   :  { %v676_v42 = vpack.c.bf16 %v656_v13, %v655_v12  ;;  %1746 = vmatprep.subr.bf16.mxu1 %v1937_v19 }
 0x1f3   :  { %v675_v17 = vpack.c.bf16 %v654_v16, %v653_v15 }
 0x1f5   :  { %1868 = vmatprep.mubr.msk.bf16.mxu1 %vm701_vm1, %v675_v17  ;;  %1747 = vmatpush3.bf16.msra.mxu1 %v1938_v20 }
 0x1f6   :  { %1869 = vmatmul.mubr.msk.bf16.gmra.mrb[16].mxu1 %vm701_vm1, %v676_v42  ;;  %1748 = vmatprep.subr.bf16.mxu1 %v1939_v21 }
 0x1f9   :  { %1749 = vmatpush3.bf16.msra.mxu1 %v1940_v22 }
 0x1fa   :  { %1750 = vmatprep.subr.bf16.mxu1 %v1941_v23 }
 0x1fd   :  { %1751 = vmatpush3.bf16.msra.mxu1 %v1942_v25 }
 0x1fe   :  { %1752 = vmatprep.subr.bf16.mxu1 %v1943_v26 }
 0x201   :  { %1753 = vmatpush3.bf16.msra.mxu1 %v1944_v36 }
 0x269   :  { %v1854_v31 = vpop.f32.mrb[0].mxu1 }
 0x26a   :  { %v853_v27 = vmul.f32 %v1854_v31, %v2432_v24  ;;  %v766_v30 = vpop.f32.mrb[1].mxu1 }
 0x26b   :  { %v851_v37 = vmul.f32 %v2432_v24, %v766_v30  ;;  %v1855_v44 = vpop.f32.mrb[2].mxu1 }
 0x26c   :  { %v879_v33 = vadd.f32 %v2437_v32, %v853_v27  ;;  %v854_v34 = vmul.f32 %v1855_v44, %v2432_v24  ;;  %v769_v35 = vpop.f32.mrb[3].mxu1 }
 0x26d   :  { %v877_v38 = vadd.f32 %v2437_v32, %v851_v37  ;;  %v852_v39 = vmul.f32 %v2432_v24, %v769_v35 }
 0x26e   :  { %v880_v40 = vadd.f32 %v2437_v32, %v854_v34  ;;  %v899_v45 = vmax.f32 %v879_v33, 0.0 }
 0x26f   :  { %v878_v41 = vadd.f32 %v2437_v32, %v852_v39  ;;  %v897_v47 = vmax.f32 %v877_v38, 0.0 }
 0x270   :  { %v900_v46 = vmax.f32 %v880_v40, 0.0 }
 0x271   :  { %v898_v48 = vmax.f32 %v878_v41, 0.0 }
 0x272   :  { %v936_v49 = vpack.c.bf16 %v900_v46, %v899_v45  ;;  %v1945_v46 = vld [vmem:[#allocation2 + $0x68] sm:$0xff]  }
 0x273   :  { %v935_v50 = vpack.c.bf16 %v898_v48, %v897_v47  ;;  %v1946_v47 = vld [vmem:[#allocation2 + $0x28] sm:$0xff]   ;;  %1754 = vmatprep.subr.bf16.mxu1 %v1945_v46 }
 0x274   :  { %1755 = vmatpush3.bf16.msra.mxu1 %v1946_v47 }
 0x275   :  { %1058 = vmatmul.mubr.bf16.vlgmr.msra.gmra.mrb[20].mxu0 %v935_v50 }
 0x276   :  { %1067 = vmatprep.mubr.bf16.mxu0 %v2003_v1 }
 0x27d   :  { %1068 = vmatmul.mubr.bf16.gmra.mrb[24].mxu0 %v936_v49 }
 0x27e   :  { %1077 = vmatprep.mubr.bf16.mxu0 %v2003_v1 }
 0x281   :  { %v1858_v51 = vpop.f32.mrb[4].mxu1 }
 0x282   :  { %v857_v52 = vmul.f32 %v1858_v51, %v2432_v24  ;;  %v782_v53 = vpop.f32.mrb[5].mxu1 }
 0x283   :  { %v855_v54 = vmul.f32 %v2432_v24, %v782_v53  ;;  %v1859_v55 = vpop.f32.mrb[6].mxu1  ;;  %v1947_v53 = vld [vmem:[#allocation2 + $0x70] sm:$0xff]  }
 0x284   :  { %v883_v56 = vadd.f32 %v2437_v32, %v857_v52  ;;  %v858_v57 = vmul.f32 %v1859_v55, %v2432_v24  ;;  %v785_v58 = vpop.f32.mrb[7].mxu1  ;;  %1756 = vmatprep.subr.bf16.mxu1 %v1947_v53 }
 0x285   :  { %v881_v59 = vadd.f32 %v2437_v32, %v855_v54  ;;  %v856_v60 = vmul.f32 %v2432_v24, %v785_v58 }
 0x286   :  { %v884_v61 = vadd.f32 %v2437_v32, %v858_v57  ;;  %v903_v63 = vmax.f32 %v883_v56, 0.0  ;;  %v1948_v57 = vld [vmem:[#allocation2 + $0x30] sm:$0xff]  }
 0x287   :  { %v882_v62 = vadd.f32 %v2437_v32, %v856_v60  ;;  %v901_v2 = vmax.f32 %v881_v59, 0.0  ;;  %1757 = vmatpush3.bf16.msra.mxu1 %v1948_v57 }
 0x288   :  { %v904_v0 = vmax.f32 %v884_v61, 0.0 }
 0x289   :  { %v902_v3 = vmax.f32 %v882_v62, 0.0  ;;  %v1949_v62 = vld [vmem:[#allocation2 + $0x78] sm:$0xff]  }
 0x28a   :  { %v938_v4 = vpack.c.bf16 %v904_v0, %v903_v63  ;;  %1758 = vmatprep.subr.bf16.mxu1 %v1949_v62 }
 0x28b   :  { %v937_v5 = vpack.c.bf16 %v902_v3, %v901_v2  ;;  %v1950_v2 = vld [vmem:[#allocation2 + $0x38] sm:$0xff]  }
 0x28c   :  { %1759 = vmatpush3.bf16.msra.mxu1 %v1950_v2 }
 0x28d   :  { %1078 = vmatmul.mubr.bf16.gmra.mrb[28].mxu0 %v937_v5 }
 0x28e   :  { %1087 = vmatprep.mubr.bf16.mxu0 %v2003_v1 }
 0x295   :  { %1088 = vmatmul.mubr.bf16.gmra.mrb[32].mxu0 %v938_v4 }
 0x296   :  { %1097 = vmatprep.mubr.bf16.mxu0 %v2003_v1 }
 0x299   :  { %v1862_v6 = vpop.f32.mrb[8].mxu1 }
 0x29a   :  { %v861_v7 = vmul.f32 %v1862_v6, %v2432_v24  ;;  %v798_v8 = vpop.f32.mrb[9].mxu1 }
 0x29b   :  { %v859_v9 = vmul.f32 %v2432_v24, %v798_v8  ;;  %v1863_v10 = vpop.f32.mrb[10].mxu1 }
 0x29c   :  { %v887_v11 = vadd.f32 %v2437_v32, %v861_v7  ;;  %v862_v12 = vmul.f32 %v1863_v10, %v2432_v24  ;;  %v801_v13 = vpop.f32.mrb[11].mxu1 }
 0x29d   :  { %v885_v14 = vadd.f32 %v2437_v32, %v859_v9  ;;  %v860_v15 = vmul.f32 %v2432_v24, %v801_v13 }
 0x29e   :  { %v888_v16 = vadd.f32 %v2437_v32, %v862_v12  ;;  %v907_v17 = vmax.f32 %v887_v11, 0.0 }
 0x29f   :  { %v886_v42 = vadd.f32 %v2437_v32, %v860_v15  ;;  %v905_v18 = vmax.f32 %v885_v14, 0.0 }
 0x2a0   :  { %v908_v43 = vmax.f32 %v888_v16, 0.0 }
 0x2a1   :  { %v906_v19 = vmax.f32 %v886_v42, 0.0 }
 0x2a2   :  { %v940_v20 = vpack.c.bf16 %v908_v43, %v907_v17 }
 0x2a3   :  { %v939_v21 = vpack.c.bf16 %v906_v19, %v905_v18 }
 0x2a5   :  { %1098 = vmatmul.mubr.bf16.gmra.mrb[36].mxu0 %v939_v21 }
 0x2a6   :  { %1107 = vmatprep.mubr.bf16.mxu0 %v2003_v1 }
 0x2ad   :  { %1108 = vmatmul.mubr.bf16.gmra.mrb[40].mxu0 %v940_v20 }
 0x2ae   :  { %1117 = vmatprep.mubr.bf16.mxu0 %v2003_v1 }
 0x2b1   :  { %v1866_v22 = vpop.f32.mrb[12].mxu1 }
 0x2b2   :  { %v865_v23 = vmul.f32 %v1866_v22, %v2432_v24  ;;  %v814_v25 = vpop.f32.mrb[13].mxu1 }
 0x2b3   :  { %v863_v31 = vmul.f32 %v2432_v24, %v814_v25  ;;  %v1867_v26 = vpop.f32.mrb[14].mxu1 }
 0x2b4   :  { %v891_v27 = vadd.f32 %v2437_v32, %v865_v23  ;;  %v866_v30 = vmul.f32 %v1867_v26, %v2432_v24  ;;  %v817_v37 = vpop.f32.mrb[15].mxu1 }
 0x2b5   :  { %v889_v44 = vadd.f32 %v2437_v32, %v863_v31  ;;  %v864_v33 = vmul.f32 %v2432_v24, %v817_v37 }
 0x2b6   :  { %v892_v34 = vadd.f32 %v2437_v32, %v866_v30  ;;  %v911_v36 = vmax.f32 %v891_v27, 0.0 }
 0x2b7   :  { %v890_v35 = vadd.f32 %v2437_v32, %v864_v33  ;;  %v909_v39 = vmax.f32 %v889_v44, 0.0 }
 0x2b8   :  { %v912_v38 = vmax.f32 %v892_v34, 0.0 }
 0x2b9   :  { %v910_v40 = vmax.f32 %v890_v35, 0.0 }
 0x2ba   :  { %v942_v41 = vpack.c.bf16 %v912_v38, %v911_v36 }
 0x2bb   :  { %v941_v45 = vpack.c.bf16 %v910_v40, %v909_v39 }
 0x2bd   :  { %1118 = vmatmul.mubr.bf16.gmra.mrb[44].mxu0 %v941_v45 }
 0x2be   :  { %1127 = vmatprep.mubr.bf16.mxu0 %v2003_v1 }
 0x2c5   :  { %1128 = vmatmul.mubr.bf16.gmra.mrb[48].mxu0 %v942_v41 }
 0x2c6   :  { %1137 = vmatprep.mubr.bf16.mxu0 %v2003_v1 }
 0x2c9   :  { %v1870_v48 = vpop.f32.mrb[16].mxu1 }
 0x2ca   :  { %v869_v49 = vmul.f32 %v1870_v48, %v2432_v24  ;;  %v830_v50 = vpop.f32.mrb[17].mxu1 }
 0x2cb   :  { %v867_v51 = vmul.f32 %v2432_v24, %v830_v50  ;;  %v1871_v52 = vpop.f32.mrb[18].mxu1 }
 0x2cc   :  { %v895_v54 = vadd.f32 %v2437_v32, %v869_v49  ;;  %v870_v55 = vmul.f32 %v1871_v52, %v2432_v24  ;;  %v833_v56 = vpop.f32.mrb[19].mxu1 }
 0x2cd   :  { %v893_v58 = vadd.f32 %v2437_v32, %v867_v51  ;;  %v868_v59 = vmul.f32 %v2432_v24, %v833_v56  ;;  %v933_v24 = vld [vmem:[%s2659_s11] sm:$0x3] }
 0x2ce   :  { %v896_v60 = vadd.f32 %v2437_v32, %v870_v55  ;;  %v915_v63 = vmax.f32 %v895_v54, 0.0  ;;  %v2495_v7 = vrot.slane %v933_v24, %v2200_v29  ;;  %v2498_v8 = vrot.slane %v933_v24, %v2198_v28 }
 0x2cf   :  { %v894_v61 = vadd.f32 %v2437_v32, %v868_v59  ;;  %v913_v3 = vmax.f32 %v893_v58, 0.0  ;;  %v934_v32 = vld [vmem:[%s2660_s12] sm:$0x3] }
 0x2d0   :  { %v916_v0 = vmax.f32 %v896_v60, 0.0  ;;  %v2501_v9 = vrot.slane %v934_v32, %v2200_v29 }
 0x2d1   :  { %v914_v4 = vmax.f32 %v894_v61, 0.0 }
 0x2d2   :  { %v944_v5 = vpack.c.bf16 %v916_v0, %v915_v63 }
 0x2d3   :  { %v943_v6 = vpack.c.bf16 %v914_v4, %v913_v3 }
 0x2d5   :  { %1138 = vmatmul.mubr.bf16.gmra.mrb[52].mxu0 %v943_v6 }
 0x2d6   :  { %1147 = vmatprep.mubr.bf16.mxu0 %v2003_v1  ;;  %v2504_v1 = vrot.slane %v934_v32, %v2198_v28 }
 0x2dd   :  { %1148 = vmatmul.mubr.bf16.gmra.mrb[56].mxu0 %v944_v5 }
 0x348   :  { %v1059_v10 = vpop.f32.mrb[20].mxu0 }
 0x349   :  { %v1169_v11 = vmul.f32 %v2495_v7, %v1059_v10  ;;  %v1061_v12 = vpop.f32.mrb[21].mxu0 }
 0x34a   :  { %v1170_v13 = vmul.f32 %v2498_v8, %v1061_v12  ;;  %v1063_v14 = vpop.f32.mrb[22].mxu0 }
 0x34b   :  { %v1220_v15 = vadd.f32 %v2501_v9, %v1169_v11  ;;  %v1171_v16 = vmul.f32 %v2495_v7, %v1063_v14  ;;  %v1065_v42 = vpop.f32.mrb[23].mxu0 }
 0x34c   :  { %v1221_v17 = vadd.f32 %v2504_v1, %v1170_v13  ;;  %v1172_v29 = vmul.f32 %v2498_v8, %v1065_v42 }
 0x34d   :  { %v1222_v43 = vadd.f32 %v2501_v9, %v1171_v16  ;;  %v1260_v18 = vmax.f32 %v1220_v15, 0.0 }
 0x34e   :  { %v1223_v28 = vadd.f32 %v2504_v1, %v1172_v29  ;;  %v1261_v20 = vmax.f32 %v1221_v17, 0.0 }
 0x34f   :  { %v1262_v19 = vmax.f32 %v1222_v43, 0.0 }
 0x350   :  { %v1263_v21 = vmax.f32 %v1223_v28, 0.0  ;;  %v1069_v22 = vpop.f32.mrb[24].mxu0 }
 0x351   :  { %v1334_v23 = vpack.c.bf16 %v1262_v19, %v1260_v18  ;;  %v1173_v25 = vmul.f32 %v2495_v7, %v1069_v22  ;;  %v1071_v31 = vpop.f32.mrb[25].mxu0 }
 0x352   :  { %v1174_v26 = vmul.f32 %v2498_v8, %v1071_v31  ;;  %v1073_v27 = vpop.f32.mrb[26].mxu0  ;;  %v1335_v30 = vpack.c.bf16 %v1263_v21, %v1261_v20 }
 0x353   :  { %v1224_v37 = vadd.f32 %v2501_v9, %v1173_v25  ;;  %v1175_v44 = vmul.f32 %v2495_v7, %v1073_v27  ;;  %v1075_v33 = vpop.f32.mrb[27].mxu0 }
 0x354   :  { %v1225_v34 = vadd.f32 %v2504_v1, %v1174_v26  ;;  %v1176_v35 = vmul.f32 %v2498_v8, %v1075_v33  ;;  %1482 = vmatprep.mubr.bf16.mxu1 %v1335_v30 }
 0x355   :  { %v1226_v36 = vadd.f32 %v2501_v9, %v1175_v44  ;;  %1483 = vmatmul.mubr.bf16.vlgmr.msra.gmra.mrb[20].mxu1 %v1334_v23  ;;  %v1264_v39 = vmax.f32 %v1224_v37, 0.0 }
 0x356   :  { %v1227_v38 = vadd.f32 %v2504_v1, %v1176_v35  ;;  %v1265_v41 = vmax.f32 %v1225_v34, 0.0 }
 0x357   :  { %v1266_v40 = vmax.f32 %v1226_v36, 0.0 }
 0x358   :  { %v1267_v45 = vmax.f32 %v1227_v38, 0.0 }
 0x359   :  { %v1336_v46 = vpack.c.bf16 %v1266_v40, %v1264_v39 }
 0x35a   :  { %v1337_v47 = vpack.c.bf16 %v1267_v45, %v1265_v41 }
 0x35c   :  { %1490 = vmatprep.mubr.bf16.mxu1 %v1337_v47 }
 0x35d   :  { %1491 = vmatmul.mubr.bf16.gmra.mrb[24].mxu1 %v1336_v46 }
 0x360   :  { %v1079_v48 = vpop.f32.mrb[28].mxu0 }
 0x361   :  { %v1177_v49 = vmul.f32 %v2495_v7, %v1079_v48  ;;  %v1081_v50 = vpop.f32.mrb[29].mxu0 }
 0x362   :  { %v1178_v51 = vmul.f32 %v2498_v8, %v1081_v50  ;;  %v1083_v52 = vpop.f32.mrb[30].mxu0 }
 0x363   :  { %v1228_v53 = vadd.f32 %v2501_v9, %v1177_v49  ;;  %v1179_v54 = vmul.f32 %v2495_v7, %v1083_v52  ;;  %v1085_v55 = vpop.f32.mrb[31].mxu0 }
 0x364   :  { %v1229_v56 = vadd.f32 %v2504_v1, %v1178_v51  ;;  %v1180_v57 = vmul.f32 %v2498_v8, %v1085_v55 }
 0x365   :  { %v1230_v58 = vadd.f32 %v2501_v9, %v1179_v54  ;;  %v1268_v60 = vmax.f32 %v1228_v53, 0.0 }
 0x366   :  { %v1231_v59 = vadd.f32 %v2504_v1, %v1180_v57  ;;  %v1269_v62 = vmax.f32 %v1229_v56, 0.0 }
 0x367   :  { %v1270_v61 = vmax.f32 %v1230_v58, 0.0 }
 0x368   :  { %v1271_v63 = vmax.f32 %v1231_v59, 0.0  ;;  %v1089_v0 = vpop.f32.mrb[32].mxu0 }
 0x369   :  { %v1181_v2 = vmul.f32 %v2495_v7, %v1089_v0  ;;  %v1091_v3 = vpop.f32.mrb[33].mxu0  ;;  %v1338_v4 = vpack.c.bf16 %v1270_v61, %v1268_v60 }
 0x36a   :  { %v1182_v5 = vmul.f32 %v2498_v8, %v1091_v3  ;;  %v1093_v6 = vpop.f32.mrb[34].mxu0  ;;  %v1339_v24 = vpack.c.bf16 %v1271_v63, %v1269_v62 }
 0x36b   :  { %v1232_v32 = vadd.f32 %v2501_v9, %v1181_v2  ;;  %v1183_v10 = vmul.f32 %v2495_v7, %v1093_v6  ;;  %v1095_v11 = vpop.f32.mrb[35].mxu0 }
 0x36c   :  { %v1233_v12 = vadd.f32 %v2504_v1, %v1182_v5  ;;  %v1184_v13 = vmul.f32 %v2498_v8, %v1095_v11  ;;  %1498 = vmatprep.mubr.bf16.mxu1 %v1339_v24 }
 0x36d   :  { %v1234_v14 = vadd.f32 %v2501_v9, %v1183_v10  ;;  %1499 = vmatmul.mubr.bf16.gmra.mrb[28].mxu1 %v1338_v4  ;;  %v1272_v16 = vmax.f32 %v1232_v32, 0.0 }
 0x36e   :  { %v1235_v15 = vadd.f32 %v2504_v1, %v1184_v13  ;;  %v1273_v17 = vmax.f32 %v1233_v12, 0.0 }
 0x36f   :  { %v1274_v42 = vmax.f32 %v1234_v14, 0.0 }
 0x370   :  { %v1275_v29 = vmax.f32 %v1235_v15, 0.0 }
 0x371   :  { %v1340_v43 = vpack.c.bf16 %v1274_v42, %v1272_v16 }
 0x372   :  { %v1341_v28 = vpack.c.bf16 %v1275_v29, %v1273_v17 }
 0x374   :  { %1506 = vmatprep.mubr.bf16.mxu1 %v1341_v28 }
 0x375   :  { %1507 = vmatmul.mubr.bf16.gmra.mrb[32].mxu1 %v1340_v43 }
 0x378   :  { %v1099_v18 = vpop.f32.mrb[36].mxu0 }
 0x379   :  { %v1185_v19 = vmul.f32 %v2495_v7, %v1099_v18  ;;  %v1101_v20 = vpop.f32.mrb[37].mxu0 }
 0x37a   :  { %v1186_v21 = vmul.f32 %v2498_v8, %v1101_v20  ;;  %v1103_v22 = vpop.f32.mrb[38].mxu0 }
 0x37b   :  { %v1236_v23 = vadd.f32 %v2501_v9, %v1185_v19  ;;  %v1187_v25 = vmul.f32 %v2495_v7, %v1103_v22  ;;  %v1105_v31 = vpop.f32.mrb[39].mxu0 }
 0x37c   :  { %v1237_v26 = vadd.f32 %v2504_v1, %v1186_v21  ;;  %v1188_v27 = vmul.f32 %v2498_v8, %v1105_v31 }
 0x37d   :  { %v1238_v30 = vadd.f32 %v2501_v9, %v1187_v25  ;;  %v1276_v44 = vmax.f32 %v1236_v23, 0.0 }
 0x37e   :  { %v1239_v37 = vadd.f32 %v2504_v1, %v1188_v27  ;;  %v1277_v34 = vmax.f32 %v1237_v26, 0.0 }
 0x37f   :  { %v1278_v33 = vmax.f32 %v1238_v30, 0.0 }
 0x380   :  { %v1279_v35 = vmax.f32 %v1239_v37, 0.0  ;;  %v1109_v36 = vpop.f32.mrb[40].mxu0 }
 0x381   :  { %v1189_v38 = vmul.f32 %v2495_v7, %v1109_v36  ;;  %v1111_v39 = vpop.f32.mrb[41].mxu0  ;;  %v1342_v40 = vpack.c.bf16 %v1278_v33, %v1276_v44 }
 0x382   :  { %v1190_v41 = vmul.f32 %v2498_v8, %v1111_v39  ;;  %v1113_v45 = vpop.f32.mrb[42].mxu0  ;;  %v1343_v46 = vpack.c.bf16 %v1279_v35, %v1277_v34 }
 0x383   :  { %v1240_v47 = vadd.f32 %v2501_v9, %v1189_v38  ;;  %v1191_v48 = vmul.f32 %v2495_v7, %v1113_v45  ;;  %v1115_v49 = vpop.f32.mrb[43].mxu0 }
 0x384   :  { %v1241_v50 = vadd.f32 %v2504_v1, %v1190_v41  ;;  %v1192_v51 = vmul.f32 %v2498_v8, %v1115_v49  ;;  %1514 = vmatprep.mubr.bf16.mxu1 %v1343_v46 }
 0x385   :  { %v1242_v52 = vadd.f32 %v2501_v9, %v1191_v48  ;;  %1515 = vmatmul.mubr.bf16.gmra.mrb[36].mxu1 %v1342_v40  ;;  %v1280_v54 = vmax.f32 %v1240_v47, 0.0 }
 0x386   :  { %v1243_v53 = vadd.f32 %v2504_v1, %v1192_v51  ;;  %v1281_v56 = vmax.f32 %v1241_v50, 0.0 }
 0x387   :  { %v1282_v55 = vmax.f32 %v1242_v52, 0.0 }
 0x388   :  { %v1283_v57 = vmax.f32 %v1243_v53, 0.0 }
 0x389   :  { %v1344_v58 = vpack.c.bf16 %v1282_v55, %v1280_v54 }
 0x38a   :  { %v1345_v59 = vpack.c.bf16 %v1283_v57, %v1281_v56 }
 0x38c   :  { %1522 = vmatprep.mubr.bf16.mxu1 %v1345_v59 }
 0x38d   :  { %1523 = vmatmul.mubr.bf16.gmra.mrb[40].mxu1 %v1344_v58 }
 0x390   :  { %v1119_v60 = vpop.f32.mrb[44].mxu0 }
 0x391   :  { %v1193_v61 = vmul.f32 %v2495_v7, %v1119_v60  ;;  %v1121_v62 = vpop.f32.mrb[45].mxu0 }
 0x392   :  { %v1194_v63 = vmul.f32 %v2498_v8, %v1121_v62  ;;  %v1123_v0 = vpop.f32.mrb[46].mxu0 }
 0x393   :  { %v1244_v2 = vadd.f32 %v2501_v9, %v1193_v61  ;;  %v1195_v3 = vmul.f32 %v2495_v7, %v1123_v0  ;;  %v1125_v4 = vpop.f32.mrb[47].mxu0 }
 0x394   :  { %v1245_v5 = vadd.f32 %v2504_v1, %v1194_v63  ;;  %v1196_v6 = vmul.f32 %v2498_v8, %v1125_v4 }
 0x395   :  { %v1246_v24 = vadd.f32 %v2501_v9, %v1195_v3  ;;  %v1284_v10 = vmax.f32 %v1244_v2, 0.0 }
 0x396   :  { %v1247_v32 = vadd.f32 %v2504_v1, %v1196_v6  ;;  %v1285_v12 = vmax.f32 %v1245_v5, 0.0 }
 0x397   :  { %v1286_v11 = vmax.f32 %v1246_v24, 0.0 }
 0x398   :  { %v1287_v13 = vmax.f32 %v1247_v32, 0.0  ;;  %v1129_v14 = vpop.f32.mrb[48].mxu0 }
 0x399   :  { %v1197_v15 = vmul.f32 %v2495_v7, %v1129_v14  ;;  %v1131_v16 = vpop.f32.mrb[49].mxu0  ;;  %v1346_v42 = vpack.c.bf16 %v1286_v11, %v1284_v10  ;;  %v2589_v10 = vld [vmem:[%s2662_s14] ss:$0 sm:$0xff]  ;;  %s2004_s14 = smov [#allocation5]  }
 0x39a   :  { %v1198_v17 = vmul.f32 %v2498_v8, %v1131_v16  ;;  %v1133_v29 = vpop.f32.mrb[50].mxu0  ;;  %v1347_v43 = vpack.c.bf16 %v1287_v13, %v1285_v12 }
 0x39b   :  { %v1248_v28 = vadd.f32 %v2501_v9, %v1197_v15  ;;  %v1199_v18 = vmul.f32 %v2495_v7, %v1133_v29  ;;  %v1135_v19 = vpop.f32.mrb[51].mxu0 }
 0x39c   :  { %v1249_v20 = vadd.f32 %v2504_v1, %v1198_v17  ;;  %v1200_v21 = vmul.f32 %v2498_v8, %v1135_v19  ;;  %1530 = vmatprep.mubr.bf16.mxu1 %v1347_v43 }
 0x39d   :  { %v1250_v22 = vadd.f32 %v2501_v9, %v1199_v18  ;;  %1531 = vmatmul.mubr.bf16.gmra.mrb[44].mxu1 %v1346_v42  ;;  %v1288_v25 = vmax.f32 %v1248_v28, 0.0 }
 0x39e   :  { %v1251_v23 = vadd.f32 %v2504_v1, %v1200_v21  ;;  %v1289_v26 = vmax.f32 %v1249_v20, 0.0 }
 0x39f   :  { %v1290_v31 = vmax.f32 %v1250_v22, 0.0 }
 0x3a0   :  { %v1291_v27 = vmax.f32 %v1251_v23, 0.0 }
 0x3a1   :  { %v1348_v30 = vpack.c.bf16 %v1290_v31, %v1288_v25 }
 0x3a2   :  { %v1349_v37 = vpack.c.bf16 %v1291_v27, %v1289_v26 }
 0x3a4   :  { %1538 = vmatprep.mubr.bf16.mxu1 %v1349_v37 }
 0x3a5   :  { %1539 = vmatmul.mubr.bf16.gmra.mrb[48].mxu1 %v1348_v30 }
 0x3a8   :  { %v1139_v44 = vpop.f32.mrb[52].mxu0 }
 0x3a9   :  { %v1201_v33 = vmul.f32 %v2495_v7, %v1139_v44  ;;  %v1141_v34 = vpop.f32.mrb[53].mxu0 }
 0x3aa   :  { %v1202_v35 = vmul.f32 %v2498_v8, %v1141_v34  ;;  %v1143_v36 = vpop.f32.mrb[54].mxu0 }
 0x3ab   :  { %v1252_v38 = vadd.f32 %v2501_v9, %v1201_v33  ;;  %v1203_v39 = vmul.f32 %v2495_v7, %v1143_v36  ;;  %v1145_v40 = vpop.f32.mrb[55].mxu0 }
 0x3ac   :  { %v1253_v41 = vadd.f32 %v2504_v1, %v1202_v35  ;;  %v1204_v45 = vmul.f32 %v2498_v8, %v1145_v40 }
 0x3ad   :  { %v1254_v46 = vadd.f32 %v2501_v9, %v1203_v39  ;;  %v1292_v48 = vmax.f32 %v1252_v38, 0.0 }
 0x3ae   :  { %v1255_v47 = vadd.f32 %v2504_v1, %v1204_v45  ;;  %v1293_v50 = vmax.f32 %v1253_v41, 0.0 }
 0x3af   :  { %v1294_v49 = vmax.f32 %v1254_v46, 0.0 }
 0x3b0   :  { %v1295_v51 = vmax.f32 %v1255_v47, 0.0  ;;  %v1149_v52 = vpop.f32.mrb[56].mxu0 }
 0x3b1   :  { %v1205_v53 = vmul.f32 %v2495_v7, %v1149_v52  ;;  %v1151_v54 = vpop.f32.mrb[57].mxu0  ;;  %v1350_v55 = vpack.c.bf16 %v1294_v49, %v1292_v48 }
 0x3b2   :  { %v1206_v56 = vmul.f32 %v2498_v8, %v1151_v54  ;;  %v1153_v57 = vpop.f32.mrb[58].mxu0  ;;  %v1351_v58 = vpack.c.bf16 %v1295_v51, %v1293_v50 }
 0x3b3   :  { %v1256_v59 = vadd.f32 %v2501_v9, %v1205_v53  ;;  %v1207_v60 = vmul.f32 %v2495_v7, %v1153_v57  ;;  %v1155_v61 = vpop.f32.mrb[59].mxu0 }
 0x3b4   :  { %v1257_v62 = vadd.f32 %v2504_v1, %v1206_v56  ;;  %v1208_v63 = vmul.f32 %v2498_v8, %v1155_v61  ;;  %1546 = vmatprep.mubr.bf16.mxu1 %v1351_v58 }
 0x3b5   :  { %v1258_v0 = vadd.f32 %v2501_v9, %v1207_v60  ;;  %1547 = vmatmul.mubr.bf16.gmra.mrb[52].mxu1 %v1350_v55  ;;  %v1296_v3 = vmax.f32 %v1256_v59, 0.0 }
 0x3b6   :  { %v1259_v2 = vadd.f32 %v2504_v1, %v1208_v63  ;;  %v1297_v5 = vmax.f32 %v1257_v62, 0.0  ;;  %v2594_v1 = vld [vmem:[%s2663_s15] ss:$0 sm:$0xff]  ;;  %s1640_s15 = sshll.u32 %s2004_s14, 4  ;;  %s1641_s15 = int_to_ptr.vmem [resolvable:$true] %s1640_s15 }
 0x3b7   :  { %v1298_v4 = vmax.f32 %v1258_v0, 0.0  ;;  %s1973_s26 = scalar_lea.vmem %s1641_s15, 2560  ;;  %p1978_p9 = scmp.lt.s32.totalorder %s1641_s15, %s1641_s15 }
 0x3b8   :  { %v1299_v6 = vmax.f32 %v1259_v2, 0.0  ;;  %p1974_p8 = scmp.ne.s32.totalorder %s1641_s15, %s1973_s26  ;;  %p1979_p10 = scmp.lt.s32.totalorder %s1973_s26, %s1973_s26 }
 0x3b9   :  { %v1352_v24 = vpack.c.bf16 %v1298_v4, %v1296_v3 }
 0x3ba   :  { %v1353_v32 = vpack.c.bf16 %v1299_v6, %v1297_v5  ;;  %p1980_p11 = por %p1979_p10, %p1978_p9 }
 0x3bc   :  { %1554 = vmatprep.mubr.bf16.mxu1 %v1353_v32  ;;  %p1981_p12 = pnand %p1980_p11, %p1974_p8 }
 0x3bd   :  { %1555 = vmatmul.mubr.bf16.gmra.mrb[56].mxu1 %v1352_v24 }
 0x428   :  { %v1760_v7 = vpop.f32.mrb[20].mxu1 }
 0x429   :  { %v1761_v8 = vpop.f32.mrb[21].mxu1 }
 0x42a   :  { %v1762_v11 = vadd.f32 %v1761_v8, %v1760_v7  ;;  %v1763_v9 = vpop.f32.mrb[22].mxu1 }
 0x42b   :  { %v1764_v12 = vpop.f32.mrb[23].mxu1 }
 0x42c   :  { %v1569_v13 = vmul.f32 %v1762_v11, %v2589_v10  ;;  %v1765_v14 = vadd.f32 %v1764_v12, %v1763_v9 }
 0x42e   :  { %v1595_v15 = vadd.f32 %v2594_v1, %v1569_v13  ;;  %v1570_v16 = vmul.f32 %v1765_v14, %v2589_v10 }
 0x430   :  { %1615 = vst [vmem:[#allocation5] sm:$0xff] %v1595_v15  ;;  %v1596_v42 = vadd.f32 %v2594_v1, %v1570_v16  ;;  %v1766_v17 = vpop.f32.mrb[24].mxu1 }
 0x431   :  { %v1767_v29 = vpop.f32.mrb[25].mxu1 }
 0x432   :  { %1616 = vst [vmem:[#allocation5 + $0x8] sm:$0xff] %v1596_v42  ;;  %v1768_v43 = vadd.f32 %v1767_v29, %v1766_v17  ;;  %v1769_v28 = vpop.f32.mrb[26].mxu1 }
 0x433   :  { %v1770_v18 = vpop.f32.mrb[27].mxu1 }
 0x434   :  { %v1571_v19 = vmul.f32 %v1768_v43, %v2589_v10  ;;  %v1771_v20 = vadd.f32 %v1770_v18, %v1769_v28 }
 0x436   :  { %v1597_v21 = vadd.f32 %v2594_v1, %v1571_v19  ;;  %v1572_v22 = vmul.f32 %v1771_v20, %v2589_v10 }
 0x438   :  { %1617 = vst [vmem:[#allocation5 + $0x10] sm:$0xff] %v1597_v21  ;;  %v1598_v23 = vadd.f32 %v2594_v1, %v1572_v22 }
 0x43a   :  { %1618 = vst [vmem:[#allocation5 + $0x18] sm:$0xff] %v1598_v23 }
 0x440   :  { %v1772_v25 = vpop.f32.mrb[28].mxu1 }
 0x441   :  { %v1773_v31 = vpop.f32.mrb[29].mxu1 }
 0x442   :  { %v1774_v26 = vadd.f32 %v1773_v31, %v1772_v25  ;;  %v1775_v27 = vpop.f32.mrb[30].mxu1 }
 0x443   :  { %v1776_v30 = vpop.f32.mrb[31].mxu1 }
 0x444   :  { %v1573_v37 = vmul.f32 %v1774_v26, %v2589_v10  ;;  %v1777_v44 = vadd.f32 %v1776_v30, %v1775_v27 }
 0x446   :  { %v1599_v33 = vadd.f32 %v2594_v1, %v1573_v37  ;;  %v1574_v34 = vmul.f32 %v1777_v44, %v2589_v10 }
 0x448   :  { %1619 = vst [vmem:[#allocation5 + $0x20] sm:$0xff] %v1599_v33  ;;  %v1600_v35 = vadd.f32 %v2594_v1, %v1574_v34  ;;  %v1778_v36 = vpop.f32.mrb[32].mxu1 }
 0x449   :  { %v1779_v38 = vpop.f32.mrb[33].mxu1 }
 0x44a   :  { %1620 = vst [vmem:[#allocation5 + $0x28] sm:$0xff] %v1600_v35  ;;  %v1780_v39 = vadd.f32 %v1779_v38, %v1778_v36  ;;  %v1781_v40 = vpop.f32.mrb[34].mxu1 }
 0x44b   :  { %v1782_v41 = vpop.f32.mrb[35].mxu1 }
 0x44c   :  { %v1575_v45 = vmul.f32 %v1780_v39, %v2589_v10  ;;  %v1783_v46 = vadd.f32 %v1782_v41, %v1781_v40 }
 0x44e   :  { %v1601_v47 = vadd.f32 %v2594_v1, %v1575_v45  ;;  %v1576_v48 = vmul.f32 %v1783_v46, %v2589_v10 }
 0x450   :  { %1621 = vst [vmem:[#allocation5 + $0x30] sm:$0xff] %v1601_v47  ;;  %v1602_v49 = vadd.f32 %v2594_v1, %v1576_v48 }
 0x452   :  { %1622 = vst [vmem:[#allocation5 + $0x38] sm:$0xff] %v1602_v49 }
 0x458   :  { %v1784_v50 = vpop.f32.mrb[36].mxu1 }
 0x459   :  { %v1785_v51 = vpop.f32.mrb[37].mxu1 }
 0x45a   :  { %v1786_v52 = vadd.f32 %v1785_v51, %v1784_v50  ;;  %v1787_v53 = vpop.f32.mrb[38].mxu1 }
 0x45b   :  { %v1788_v54 = vpop.f32.mrb[39].mxu1 }
 0x45c   :  { %v1577_v55 = vmul.f32 %v1786_v52, %v2589_v10  ;;  %v1789_v56 = vadd.f32 %v1788_v54, %v1787_v53 }
 0x45e   :  { %v1603_v57 = vadd.f32 %v2594_v1, %v1577_v55  ;;  %v1578_v58 = vmul.f32 %v1789_v56, %v2589_v10 }
 0x460   :  { %1623 = vst [vmem:[#allocation5 + $0x40] sm:$0xff] %v1603_v57  ;;  %v1604_v59 = vadd.f32 %v2594_v1, %v1578_v58  ;;  %v1790_v60 = vpop.f32.mrb[40].mxu1 }
 0x461   :  { %v1791_v61 = vpop.f32.mrb[41].mxu1 }
 0x462   :  { %1624 = vst [vmem:[#allocation5 + $0x48] sm:$0xff] %v1604_v59  ;;  %v1792_v62 = vadd.f32 %v1791_v61, %v1790_v60  ;;  %v1793_v63 = vpop.f32.mrb[42].mxu1 }
 0x463   :  { %v1794_v0 = vpop.f32.mrb[43].mxu1 }
 0x464   :  { %v1579_v2 = vmul.f32 %v1792_v62, %v2589_v10  ;;  %v1795_v3 = vadd.f32 %v1794_v0, %v1793_v63 }
 0x466   :  { %v1605_v4 = vadd.f32 %v2594_v1, %v1579_v2  ;;  %v1580_v5 = vmul.f32 %v1795_v3, %v2589_v10 }
 0x468   :  { %1625 = vst [vmem:[#allocation5 + $0x50] sm:$0xff] %v1605_v4  ;;  %v1606_v6 = vadd.f32 %v2594_v1, %v1580_v5 }
 0x46a   :  { %1626 = vst [vmem:[#allocation5 + $0x58] sm:$0xff] %v1606_v6 }
 0x470   :  { %v1796_v24 = vpop.f32.mrb[44].mxu1 }
 0x471   :  { %v1797_v32 = vpop.f32.mrb[45].mxu1 }
 0x472   :  { %v1798_v7 = vadd.f32 %v1797_v32, %v1796_v24  ;;  %v1799_v8 = vpop.f32.mrb[46].mxu1 }
 0x473   :  { %v1800_v11 = vpop.f32.mrb[47].mxu1 }
 0x474   :  { %v1581_v9 = vmul.f32 %v1798_v7, %v2589_v10  ;;  %v1801_v12 = vadd.f32 %v1800_v11, %v1799_v8 }
 0x476   :  { %v1607_v13 = vadd.f32 %v2594_v1, %v1581_v9  ;;  %v1582_v14 = vmul.f32 %v1801_v12, %v2589_v10 }
 0x478   :  { %1627 = vst [vmem:[#allocation5 + $0x60] sm:$0xff] %v1607_v13  ;;  %v1608_v15 = vadd.f32 %v2594_v1, %v1582_v14  ;;  %v1802_v16 = vpop.f32.mrb[48].mxu1 }
 0x479   :  { %v1803_v42 = vpop.f32.mrb[49].mxu1 }
 0x47a   :  { %1628 = vst [vmem:[#allocation5 + $0x68] sm:$0xff] %v1608_v15  ;;  %v1804_v17 = vadd.f32 %v1803_v42, %v1802_v16  ;;  %v1805_v29 = vpop.f32.mrb[50].mxu1 }
 0x47b   :  { %v1806_v43 = vpop.f32.mrb[51].mxu1 }
 0x47c   :  { %v1583_v28 = vmul.f32 %v1804_v17, %v2589_v10  ;;  %v1807_v18 = vadd.f32 %v1806_v43, %v1805_v29 }
 0x47e   :  { %v1609_v19 = vadd.f32 %v2594_v1, %v1583_v28  ;;  %v1584_v20 = vmul.f32 %v1807_v18, %v2589_v10 }
 0x480   :  { %1629 = vst [vmem:[#allocation5 + $0x70] sm:$0xff] %v1609_v19  ;;  %v1610_v21 = vadd.f32 %v2594_v1, %v1584_v20 }
 0x482   :  { %1630 = vst [vmem:[#allocation5 + $0x78] sm:$0xff] %v1610_v21 }
 0x488   :  { %v1808_v22 = vpop.f32.mrb[52].mxu1 }
 0x489   :  { %v1809_v23 = vpop.f32.mrb[53].mxu1 }
 0x48a   :  { %v1810_v25 = vadd.f32 %v1809_v23, %v1808_v22  ;;  %v1811_v31 = vpop.f32.mrb[54].mxu1 }
 0x48b   :  { %v1812_v26 = vpop.f32.mrb[55].mxu1 }
 0x48c   :  { %v1585_v27 = vmul.f32 %v1810_v25, %v2589_v10  ;;  %v1813_v30 = vadd.f32 %v1812_v26, %v1811_v31 }
 0x48e   :  { %v1611_v37 = vadd.f32 %v2594_v1, %v1585_v27  ;;  %v1586_v44 = vmul.f32 %v1813_v30, %v2589_v10 }
 0x490   :  { %1631 = vst [vmem:[#allocation5 + $0x80] sm:$0xff] %v1611_v37  ;;  %v1612_v33 = vadd.f32 %v2594_v1, %v1586_v44  ;;  %v1814_v34 = vpop.f32.mrb[56].mxu1 }
 0x491   :  { %v1815_v35 = vpop.f32.mrb[57].mxu1 }
 0x492   :  { %1632 = vst [vmem:[#allocation5 + $0x88] sm:$0xff] %v1612_v33  ;;  %v1816_v36 = vadd.f32 %v1815_v35, %v1814_v34  ;;  %v1817_v38 = vpop.f32.mrb[58].mxu1 }
 0x493   :  { %v1818_v39 = vpop.f32.mrb[59].mxu1 }
 0x494   :  { %v1587_v40 = vmul.f32 %v1816_v36, %v2589_v10  ;;  %v1819_v41 = vadd.f32 %v1818_v39, %v1817_v38 }
 0x496   :  { %v1613_v45 = vadd.f32 %v2594_v1, %v1587_v40  ;;  %v1588_v46 = vmul.f32 %v1819_v41, %v2589_v10 }
 0x498   :  { %1633 = vst [vmem:[#allocation5 + $0x90] sm:$0xff] %v1613_v45  ;;  %v1614_v47 = vadd.f32 %v2594_v1, %v1588_v46 }
 0x49a   :  { %1634 = vst [vmem:[#allocation5 + $0x98] sm:$0xff] %v1614_v47 }
 0x49b   :  { %1984 = shalt.err (!%p1981_p12)
}
 0x49c   :  { %s1985_s28 = scalar_lea.hbm %s2664_s16, 2560 }
 0x49d   :  { %p1986_p13 = scmp.ne.s32.totalorder %s2664_s16, %s1985_s28  ;;  %p1989_p0 = scmp.lt.u32.totalorder %s1985_s28, %s2664_s16 }
 0x49f   :  { %p1991_p1 = pnand %p1989_p0, %p1986_p13 }
 0x4a1   :  { %1994 = shalt.err (!%p1991_p1)
}
 0x4a2   :  { %s2005_s0 = smov 128   ;;  %s2006_s7 = smov 8  }
 0x4a3   :  { %1646 = dma.vmem_to_hbm [thread:$0]  %s1641_s15, 2560, %s2664_s16, [#allocation4], %s2005_s0, %s2005_s0, %s2006_s7  }
 0x4a4   :  { %1997 = dma.done.wait [#allocation4], 2560  }
 0x4a5   :  { %1998 = vsyncadd [#allocation4], 4294964736 }
 0x4a6   :  { %1650 = vsyncpa [#allocation3], 1 }
 0x4a7   :  { %1651 = vsyncpa [#allocation4], 1 }

</bundles_post_ra>
